<compile_context>
chip_gen: v7x
topology: tpu7x:2x2x1
jax: 0.10.0
libtpu: 0.0.40
codegen_flags: <defaults>
</compile_context>

<pallas_src>
import jax
import jax.numpy as jnp
from jax.experimental import pallas as pl
from jax.experimental.pallas import tpu as pltpu

INPUT_DIM = 20
HIDDEN_DIM = 100
OUTPUT_DIM = 20
NUM_HIDDEN_LAYERS = 10
BIAS_INIT_VALUE = 0.5
BN_EPS = 1e-5

LANE = 128
SUBLANE = 8
PAD_IN = 128    # INPUT_DIM  padded to lane multiple
PAD_HID = 128   # HIDDEN_DIM padded to lane multiple
PAD_OUT = 128   # OUTPUT_DIM padded to lane multiple (lane-dense output store)
MAX_TILE = 1024  # max batch-tile rows (amortizes grid-step overhead, << VMEM budget)


def _deep_binary_net_kernel(
    x_ref,      # (TB, PAD_IN)               f32
    w_in_ref,   # (PAD_IN, PAD_HID)          bf16, BN-folded
    b_in_ref,   # (1, PAD_HID)               f32,  BN-folded
    w_h_ref,    # (L-1, PAD_HID, PAD_HID)    bf16, BN-folded
    b_h_ref,    # (L-1, PAD_HID)             f32,  BN-folded
    w_out_ref,  # (PAD_HID, PAD_OUT)         bf16
    b_out_ref,  # (1, PAD_OUT)               f32
    out_ref,    # (TB, PAD_OUT)              f32
):
    half = x_ref.shape[0] // 2

    # Two independent half-batch chains -> the scheduler can overlap the VPU epilogue /
    # MXU result pop of one half with the MXU push of the other half each layer.
    h_a = x_ref[pl.ds(0, half), :].astype(jnp.bfloat16)
    h_b = x_ref[pl.ds(half, half), :].astype(jnp.bfloat16)

    # One aligned hoisted load of all hidden-layer bias rows.
    b_h = b_h_ref[...]

    def layer(a, b, w, bias):
        # Issue both matmuls before both epilogues (same basic block -> LLO interleaves).
        s_a = jnp.dot(a, w, preferred_element_type=jnp.float32)
        s_b = jnp.dot(b, w, preferred_element_type=jnp.float32)
        a = jnp.maximum(s_a + bias, 0.0).astype(jnp.bfloat16)
        b = jnp.maximum(s_b + bias, 0.0).astype(jnp.bfloat16)
        return a, b

    # Layer 0: Linear + (folded BN) + ReLU  (Dropout = identity in eval mode)
    h_a, h_b = layer(h_a, h_b, w_in_ref[...], b_in_ref[...])

    # Hidden layers 1..L-1 (unrolled at trace time)
    for l in range(NUM_HIDDEN_LAYERS - 1):
        h_a, h_b = layer(h_a, h_b, w_h_ref[l], b_h[l:l + 1, :])

    # Output layer: Linear + Sigmoid (f32 epilogue)
    w_out = w_out_ref[...]
    b_out = b_out_ref[...]
    z_a = jnp.dot(h_a, w_out, preferred_element_type=jnp.float32) + b_out
    z_b = jnp.dot(h_b, w_out, preferred_element_type=jnp.float32) + b_out
    out_ref[pl.ds(0, half), :] = jax.nn.sigmoid(z_a).astype(out_ref.dtype)
    out_ref[pl.ds(half, half), :] = jax.nn.sigmoid(z_b).astype(out_ref.dtype)


def _round_up(n, m):
    return ((n + m - 1) // m) * m


def _pad2(a, rows, cols):
    return jnp.pad(a, ((0, rows - a.shape[0]), (0, cols - a.shape[1])))


def _fold_bn(w, b, gamma, beta, mean, var):
    """Fold eval-mode BatchNorm into the preceding Linear: y = (xW + b) * s + t."""
    scale = gamma * jax.lax.rsqrt(var + BN_EPS)
    shift = beta - mean * scale
    return w * scale[None, :], b * scale + shift


def _pick_batch_tile(batch):
    """Batch-tile rows: multiple of 16 (so each interleaved half is sublane-aligned),
    capped at MAX_TILE, and chosen so there are >=2 grid steps whenever the batch spans
    more than one tile (keeps both v7x TensorCores busy; no effect on v5e/v6e)."""
    if batch <= 16:
        return 16
    if batch >= 2 * MAX_TILE:
        return MAX_TILE
    return min(MAX_TILE, _round_up(-(-batch // 2), 16))


def deep_binary_net_forward(x, params):
    """Full forward pass in one Pallas call: BN folded, bf16 weights, batch-gridded."""
    batch = x.shape[0]
    n_h = NUM_HIDDEN_LAYERS - 1

    # --- Fold BN into the linear layers (wrapper-side, no kernel BN math) ---
    w_in_f, b_in_f = _fold_bn(
        params["w_in"], params["b_in"][0],
        params["bn_gamma"][0], params["bn_beta"][0],
        params["bn_mean"][0], params["bn_var"][0],
    )
    w_h_f, b_h_f = [], []
    for l in range(n_h):
        w, b = _fold_bn(
            params["w_h"][l], params["b_h"][l],
            params["bn_gamma"][l + 1], params["bn_beta"][l + 1],
            params["bn_mean"][l + 1], params["bn_var"][l + 1],
        )
        w_h_f.append(w)
        b_h_f.append(b)

    # --- Zero-pad to lane-aligned shapes; weights -> bf16 (MXU), biases stay f32 ---
    w_in_p = _pad2(w_in_f, PAD_IN, PAD_HID).astype(jnp.bfloat16)
    b_in_p = _pad2(b_in_f[None, :], 1, PAD_HID)
    w_h_p = jnp.stack([_pad2(w, PAD_HID, PAD_HID) for w in w_h_f]).astype(jnp.bfloat16)
    b_h_p = jnp.stack([jnp.pad(b, (0, PAD_HID - HIDDEN_DIM)) for b in b_h_f])
    w_out_p = _pad2(params["w_out"], PAD_HID, PAD_OUT).astype(jnp.bfloat16)
    b_out_p = _pad2(params["b_out"], 1, PAD_OUT)

    # --- Batch tiling ---
    tb = _pick_batch_tile(batch)
    padded_batch = _round_up(batch, tb)
    x_p = jnp.pad(
        x.astype(jnp.float32),
        ((0, padded_batch - batch), (0, PAD_IN - INPUT_DIM)),
    )
    grid = (padded_batch // tb,)

    def _resident(shape):
        # Weights/biases: same block every grid step -> stay VMEM-resident.
        ndim = len(shape)
        return pl.BlockSpec(shape, lambda i, _n=ndim: (0,) * _n)

    out_p = pl.pallas_call(
        _deep_binary_net_kernel,
        out_shape=jax.ShapeDtypeStruct((padded_batch, PAD_OUT), jnp.float32),
        grid=grid,
        in_specs=[
            pl.BlockSpec((tb, PAD_IN), lambda i: (i, 0)),
            _resident((PAD_IN, PAD_HID)),
            _resident((1, PAD_HID)),
            _resident((n_h, PAD_HID, PAD_HID)),
            _resident((n_h, PAD_HID)),
            _resident((PAD_HID, PAD_OUT)),
            _resident((1, PAD_OUT)),
        ],
        out_specs=pl.BlockSpec((tb, PAD_OUT), lambda i: (i, 0)),
        compiler_params=pltpu.CompilerParams(dimension_semantics=("parallel",)),
    )(x_p, w_in_p, b_in_p, w_h_p, b_h_p, w_out_p, b_out_p)

    return out_p[:batch, :OUTPUT_DIM]


def _xavier_uniform(key, fan_in, fan_out):
    # Matches torch.nn.init.xavier_uniform_; stored as (fan_in, fan_out) for x @ W.
    bound = (6.0 / (fan_in + fan_out)) ** 0.5
    return jax.random.uniform(key, (fan_in, fan_out), jnp.float32, -bound, bound)


def init_params(key):
    n_hidden_mats = NUM_HIDDEN_LAYERS - 1
    keys = jax.random.split(key, 2 + n_hidden_mats)

    w_in = _xavier_uniform(keys[0], INPUT_DIM, HIDDEN_DIM)
    b_in = jnp.full((1, HIDDEN_DIM), BIAS_INIT_VALUE, jnp.float32)

    w_h = jnp.stack(
        [_xavier_uniform(keys[1 + i], HIDDEN_DIM, HIDDEN_DIM) for i in range(n_hidden_mats)]
    )
    b_h = jnp.full((n_hidden_mats, HIDDEN_DIM), BIAS_INIT_VALUE, jnp.float32)

    w_out = _xavier_uniform(keys[1 + n_hidden_mats], HIDDEN_DIM, OUTPUT_DIM)
    b_out = jnp.full((1, OUTPUT_DIM), BIAS_INIT_VALUE, jnp.float32)

    # BatchNorm1d freshly-initialized state (gamma=1, beta=0, running_mean=0, running_var=1).
    bn_gamma = jnp.ones((NUM_HIDDEN_LAYERS, HIDDEN_DIM), jnp.float32)
    bn_beta = jnp.zeros((NUM_HIDDEN_LAYERS, HIDDEN_DIM), jnp.float32)
    bn_mean = jnp.zeros((NUM_HIDDEN_LAYERS, HIDDEN_DIM), jnp.float32)
    bn_var = jnp.ones((NUM_HIDDEN_LAYERS, HIDDEN_DIM), jnp.float32)

    return {
        "w_in": w_in, "b_in": b_in,
        "w_h": w_h, "b_h": b_h,
        "w_out": w_out, "b_out": b_out,
        "bn_gamma": bn_gamma, "bn_beta": bn_beta,
        "bn_mean": bn_mean, "bn_var": bn_var,
    }


def _reference_forward(x, params):
    """Pure-JAX f32 reference (un-folded, un-padded) for sanity checking."""
    def bn_relu(h, l):
        g = params["bn_gamma"][l]
        b = params["bn_beta"][l]
        m = params["bn_mean"][l]
        v = params["bn_var"][l]
        h = (h - m) * g / jnp.sqrt(v + BN_EPS) + b
        return jnp.maximum(h, 0.0)

    h = x @ params["w_in"] + params["b_in"]
    h = bn_relu(h, 0)
    for l in range(NUM_HIDDEN_LAYERS - 1):
        h = h @ params["w_h"][l] + params["b_h"][l]
        h = bn_relu(h, l + 1)
    return jax.nn.sigmoid(h @ params["w_out"] + params["b_out"])


if __name__ == "__main__":
    key = jax.random.PRNGKey(0)
    pkey, xkey = jax.random.split(key)

    params = init_params(pkey)
    batch = 8
    x = jax.random.normal(xkey, (batch, INPUT_DIM), jnp.float32)

    out = deep_binary_net_forward(x, params)
    out = jax.block_until_ready(out)

    ref = _reference_forward(x, params)
    assert out.shape == (batch, OUTPUT_DIM)
    # bf16 MXU operands through 11 chained layers -> relaxed tolerance vs f32 reference.
    assert jnp.allclose(out, ref, atol=3e-2, rtol=3e-2), (
        "mismatch vs JAX reference: max abs diff = "
        f"{float(jnp.max(jnp.abs(out - ref)))}"
    )

    print("KERNEL_OK")
</pallas_src>

<mosaic_0001>
module attributes {stable_mosaic.version = 11 : i64} {
  func.func @_deep_binary_net_kernel(%arg0: i32, %arg1: memref<16x128xf32, #tpu.memory_space<vmem>>, %arg2: memref<128x128xbf16, #tpu.memory_space<vmem>>, %arg3: memref<1x128xf32, #tpu.memory_space<vmem>>, %arg4: memref<9x128x128xbf16, #tpu.memory_space<vmem>>, %arg5: memref<9x128xf32, #tpu.memory_space<vmem>>, %arg6: memref<128x128xbf16, #tpu.memory_space<vmem>>, %arg7: memref<1x128xf32, #tpu.memory_space<vmem>>, %arg8: memref<16x128xf32, #tpu.memory_space<vmem>>) attributes {dimension_semantics = [#tpu.dimension_semantics<parallel>], iteration_bounds = array<i64: 1>, scalar_prefetch = 0 : i64, scratch_operands = 0 : i64, tpu.core_type = #tpu.core_type<tc>, window_params = [{transform_indices = @transform_0, window_bounds = array<i64: 16, 128>}, {pipeline_mode = #tpu.pipeline_mode<synchronous>, transform_indices = @transform_1, window_bounds = array<i64: 128, 128>}, {pipeline_mode = #tpu.pipeline_mode<synchronous>, transform_indices = @transform_2, window_bounds = array<i64: 1, 128>}, {pipeline_mode = #tpu.pipeline_mode<synchronous>, transform_indices = @transform_3, window_bounds = array<i64: 9, 128, 128>}, {pipeline_mode = #tpu.pipeline_mode<synchronous>, transform_indices = @transform_4, window_bounds = array<i64: 9, 128>}, {pipeline_mode = #tpu.pipeline_mode<synchronous>, transform_indices = @transform_5, window_bounds = array<i64: 128, 128>}, {pipeline_mode = #tpu.pipeline_mode<synchronous>, transform_indices = @transform_6, window_bounds = array<i64: 1, 128>}, {transform_indices = @transform_7, window_bounds = array<i64: 16, 128>}]} {
    %c0 = arith.constant 0 : index
    %c0_0 = arith.constant 0 : index
    %0 = vector.load %arg1[%c0, %c0_0] : memref<16x128xf32, #tpu.memory_space<vmem>>, vector<8x128xf32>
    %1 = arith.truncf %0 : vector<8x128xf32> to vector<8x128xbf16>
    %c8 = arith.constant 8 : index
    %c0_1 = arith.constant 0 : index
    %2 = vector.load %arg1[%c8, %c0_1] : memref<16x128xf32, #tpu.memory_space<vmem>>, vector<8x128xf32>
    %3 = arith.truncf %2 : vector<8x128xf32> to vector<8x128xbf16>
    %c0_2 = arith.constant 0 : index
    %c0_3 = arith.constant 0 : index
    %4 = vector.load %arg5[%c0_2, %c0_3] : memref<9x128xf32, #tpu.memory_space<vmem>>, vector<9x128xf32>
    %c0_4 = arith.constant 0 : index
    %c0_5 = arith.constant 0 : index
    %5 = vector.load %arg2[%c0_4, %c0_5] : memref<128x128xbf16, #tpu.memory_space<vmem>>, vector<128x128xbf16>
    %c0_6 = arith.constant 0 : index
    %c0_7 = arith.constant 0 : index
    %6 = vector.load %arg3[%c0_6, %c0_7] : memref<1x128xf32, #tpu.memory_space<vmem>>, vector<1x128xf32>
    %cst = arith.constant dense<0.000000e+00> : vector<8x128xf32>
    %7 = tpu.matmul %1, %5, %cst {dimension_numbers = #tpu.dot_dimension_numbers<[1], [0], [0], [1], [0, 0, 1, 1], [], []>} : vector<8x128xbf16>, vector<128x128xbf16>, vector<8x128xf32> -> vector<8x128xf32>
    %cst_8 = arith.constant dense<0.000000e+00> : vector<8x128xf32>
    %8 = tpu.matmul %3, %5, %cst_8 {dimension_numbers = #tpu.dot_dimension_numbers<[1], [0], [0], [1], [0, 0, 1, 1], [], []>} : vector<8x128xbf16>, vector<128x128xbf16>, vector<8x128xf32> -> vector<8x128xf32>
    %9 = vector.broadcast %6 : vector<1x128xf32> to vector<8x128xf32>
    %10 = arith.addf %7, %9 : vector<8x128xf32>
    %cst_9 = arith.constant 0.000000e+00 : f32
    %11 = vector.broadcast %cst_9 : f32 to vector<8x128xf32>
    %12 = arith.maximumf %10, %11 : vector<8x128xf32>
    %13 = arith.truncf %12 : vector<8x128xf32> to vector<8x128xbf16>
    %14 = vector.broadcast %6 : vector<1x128xf32> to vector<8x128xf32>
    %15 = arith.addf %8, %14 : vector<8x128xf32>
    %cst_10 = arith.constant 0.000000e+00 : f32
    %16 = vector.broadcast %cst_10 : f32 to vector<8x128xf32>
    %17 = arith.maximumf %15, %16 : vector<8x128xf32>
    %18 = arith.truncf %17 : vector<8x128xf32> to vector<8x128xbf16>
    %c0_11 = arith.constant 0 : index
    %c0_12 = arith.constant 0 : index
    %c0_13 = arith.constant 0 : index
    %19 = vector.load %arg4[%c0_11, %c0_12, %c0_13] : memref<9x128x128xbf16, #tpu.memory_space<vmem>>, vector<1x128x128xbf16>
    %20 = vector.shape_cast %19 : vector<1x128x128xbf16> to vector<128x128xbf16>
    %21 = vector.extract_strided_slice %4 {offsets = [0, 0], sizes = [1, 128], strides = [1, 1]} : vector<9x128xf32> to vector<1x128xf32>
    %cst_14 = arith.constant dense<0.000000e+00> : vector<8x128xf32>
    %22 = tpu.matmul %13, %20, %cst_14 {dimension_numbers = #tpu.dot_dimension_numbers<[1], [0], [0], [1], [0, 0, 1, 1], [], []>} : vector<8x128xbf16>, vector<128x128xbf16>, vector<8x128xf32> -> vector<8x128xf32>
    %cst_15 = arith.constant dense<0.000000e+00> : vector<8x128xf32>
    %23 = tpu.matmul %18, %20, %cst_15 {dimension_numbers = #tpu.dot_dimension_numbers<[1], [0], [0], [1], [0, 0, 1, 1], [], []>} : vector<8x128xbf16>, vector<128x128xbf16>, vector<8x128xf32> -> vector<8x128xf32>
    %24 = vector.broadcast %21 : vector<1x128xf32> to vector<8x128xf32>
    %25 = arith.addf %22, %24 : vector<8x128xf32>
    %cst_16 = arith.constant 0.000000e+00 : f32
    %26 = vector.broadcast %cst_16 : f32 to vector<8x128xf32>
    %27 = arith.maximumf %25, %26 : vector<8x128xf32>
    %28 = arith.truncf %27 : vector<8x128xf32> to vector<8x128xbf16>
    %29 = vector.broadcast %21 : vector<1x128xf32> to vector<8x128xf32>
    %30 = arith.addf %23, %29 : vector<8x128xf32>
    %cst_17 = arith.constant 0.000000e+00 : f32
    %31 = vector.broadcast %cst_17 : f32 to vector<8x128xf32>
    %32 = arith.maximumf %30, %31 : vector<8x128xf32>
    %33 = arith.truncf %32 : vector<8x128xf32> to vector<8x128xbf16>
    %c1 = arith.constant 1 : index
    %c0_18 = arith.constant 0 : index
    %c0_19 = arith.constant 0 : index
    %34 = vector.load %arg4[%c1, %c0_18, %c0_19] : memref<9x128x128xbf16, #tpu.memory_space<vmem>>, vector<1x128x128xbf16>
    %35 = vector.shape_cast %34 : vector<1x128x128xbf16> to vector<128x128xbf16>
    %36 = vector.extract_strided_slice %4 {offsets = [1, 0], sizes = [1, 128], strides = [1, 1]} : vector<9x128xf32> to vector<1x128xf32>
    %cst_20 = arith.constant dense<0.000000e+00> : vector<8x128xf32>
    %37 = tpu.matmul %28, %35, %cst_20 {dimension_numbers = #tpu.dot_dimension_numbers<[1], [0], [0], [1], [0, 0, 1, 1], [], []>} : vector<8x128xbf16>, vector<128x128xbf16>, vector<8x128xf32> -> vector<8x128xf32>
    %cst_21 = arith.constant dense<0.000000e+00> : vector<8x128xf32>
    %38 = tpu.matmul %33, %35, %cst_21 {dimension_numbers = #tpu.dot_dimension_numbers<[1], [0], [0], [1], [0, 0, 1, 1], [], []>} : vector<8x128xbf16>, vector<128x128xbf16>, vector<8x128xf32> -> vector<8x128xf32>
    %39 = vector.broadcast %36 : vector<1x128xf32> to vector<8x128xf32>
    %40 = arith.addf %37, %39 : vector<8x128xf32>
    %cst_22 = arith.constant 0.000000e+00 : f32
    %41 = vector.broadcast %cst_22 : f32 to vector<8x128xf32>
    %42 = arith.maximumf %40, %41 : vector<8x128xf32>
    %43 = arith.truncf %42 : vector<8x128xf32> to vector<8x128xbf16>
    %44 = vector.broadcast %36 : vector<1x128xf32> to vector<8x128xf32>
    %45 = arith.addf %38, %44 : vector<8x128xf32>
    %cst_23 = arith.constant 0.000000e+00 : f32
    %46 = vector.broadcast %cst_23 : f32 to vector<8x128xf32>
    %47 = arith.maximumf %45, %46 : vector<8x128xf32>
    %48 = arith.truncf %47 : vector<8x128xf32> to vector<8x128xbf16>
    %c2 = arith.constant 2 : index
    %c0_24 = arith.constant 0 : index
    %c0_25 = arith.constant 0 : index
    %49 = vector.load %arg4[%c2, %c0_24, %c0_25] : memref<9x128x128xbf16, #tpu.memory_space<vmem>>, vector<1x128x128xbf16>
    %50 = vector.shape_cast %49 : vector<1x128x128xbf16> to vector<128x128xbf16>
    %51 = vector.extract_strided_slice %4 {offsets = [2, 0], sizes = [1, 128], strides = [1, 1]} : vector<9x128xf32> to vector<1x128xf32>
    %cst_26 = arith.constant dense<0.000000e+00> : vector<8x128xf32>
    %52 = tpu.matmul %43, %50, %cst_26 {dimension_numbers = #tpu.dot_dimension_numbers<[1], [0], [0], [1], [0, 0, 1, 1], [], []>} : vector<8x128xbf16>, vector<128x128xbf16>, vector<8x128xf32> -> vector<8x128xf32>
    %cst_27 = arith.constant dense<0.000000e+00> : vector<8x128xf32>
    %53 = tpu.matmul %48, %50, %cst_27 {dimension_numbers = #tpu.dot_dimension_numbers<[1], [0], [0], [1], [0, 0, 1, 1], [], []>} : vector<8x128xbf16>, vector<128x128xbf16>, vector<8x128xf32> -> vector<8x128xf32>
    %54 = vector.broadcast %51 : vector<1x128xf32> to vector<8x128xf32>
    %55 = arith.addf %52, %54 : vector<8x128xf32>
    %cst_28 = arith.constant 0.000000e+00 : f32
    %56 = vector.broadcast %cst_28 : f32 to vector<8x128xf32>
    %57 = arith.maximumf %55, %56 : vector<8x128xf32>
    %58 = arith.truncf %57 : vector<8x128xf32> to vector<8x128xbf16>
    %59 = vector.broadcast %51 : vector<1x128xf32> to vector<8x128xf32>
    %60 = arith.addf %53, %59 : vector<8x128xf32>
    %cst_29 = arith.constant 0.000000e+00 : f32
    %61 = vector.broadcast %cst_29 : f32 to vector<8x128xf32>
    %62 = arith.maximumf %60, %61 : vector<8x128xf32>
    %63 = arith.truncf %62 : vector<8x128xf32> to vector<8x128xbf16>
    %c3 = arith.constant 3 : index
    %c0_30 = arith.constant 0 : index
    %c0_31 = arith.constant 0 : index
    %64 = vector.load %arg4[%c3, %c0_30, %c0_31] : memref<9x128x128xbf16, #tpu.memory_space<vmem>>, vector<1x128x128xbf16>
    %65 = vector.shape_cast %64 : vector<1x128x128xbf16> to vector<128x128xbf16>
    %66 = vector.extract_strided_slice %4 {offsets = [3, 0], sizes = [1, 128], strides = [1, 1]} : vector<9x128xf32> to vector<1x128xf32>
    %cst_32 = arith.constant dense<0.000000e+00> : vector<8x128xf32>
    %67 = tpu.matmul %58, %65, %cst_32 {dimension_numbers = #tpu.dot_dimension_numbers<[1], [0], [0], [1], [0, 0, 1, 1], [], []>} : vector<8x128xbf16>, vector<128x128xbf16>, vector<8x128xf32> -> vector<8x128xf32>
    %cst_33 = arith.constant dense<0.000000e+00> : vector<8x128xf32>
    %68 = tpu.matmul %63, %65, %cst_33 {dimension_numbers = #tpu.dot_dimension_numbers<[1], [0], [0], [1], [0, 0, 1, 1], [], []>} : vector<8x128xbf16>, vector<128x128xbf16>, vector<8x128xf32> -> vector<8x128xf32>
    %69 = vector.broadcast %66 : vector<1x128xf32> to vector<8x128xf32>
    %70 = arith.addf %67, %69 : vector<8x128xf32>
    %cst_34 = arith.constant 0.000000e+00 : f32
    %71 = vector.broadcast %cst_34 : f32 to vector<8x128xf32>
    %72 = arith.maximumf %70, %71 : vector<8x128xf32>
    %73 = arith.truncf %72 : vector<8x128xf32> to vector<8x128xbf16>
    %74 = vector.broadcast %66 : vector<1x128xf32> to vector<8x128xf32>
    %75 = arith.addf %68, %74 : vector<8x128xf32>
    %cst_35 = arith.constant 0.000000e+00 : f32
    %76 = vector.broadcast %cst_35 : f32 to vector<8x128xf32>
    %77 = arith.maximumf %75, %76 : vector<8x128xf32>
    %78 = arith.truncf %77 : vector<8x128xf32> to vector<8x128xbf16>
    %c4 = arith.constant 4 : index
    %c0_36 = arith.constant 0 : index
    %c0_37 = arith.constant 0 : index
    %79 = vector.load %arg4[%c4, %c0_36, %c0_37] : memref<9x128x128xbf16, #tpu.memory_space<vmem>>, vector<1x128x128xbf16>
    %80 = vector.shape_cast %79 : vector<1x128x128xbf16> to vector<128x128xbf16>
    %81 = vector.extract_strided_slice %4 {offsets = [4, 0], sizes = [1, 128], strides = [1, 1]} : vector<9x128xf32> to vector<1x128xf32>
    %cst_38 = arith.constant dense<0.000000e+00> : vector<8x128xf32>
    %82 = tpu.matmul %73, %80, %cst_38 {dimension_numbers = #tpu.dot_dimension_numbers<[1], [0], [0], [1], [0, 0, 1, 1], [], []>} : vector<8x128xbf16>, vector<128x128xbf16>, vector<8x128xf32> -> vector<8x128xf32>
    %cst_39 = arith.constant dense<0.000000e+00> : vector<8x128xf32>
    %83 = tpu.matmul %78, %80, %cst_39 {dimension_numbers = #tpu.dot_dimension_numbers<[1], [0], [0], [1], [0, 0, 1, 1], [], []>} : vector<8x128xbf16>, vector<128x128xbf16>, vector<8x128xf32> -> vector<8x128xf32>
    %84 = vector.broadcast %81 : vector<1x128xf32> to vector<8x128xf32>
    %85 = arith.addf %82, %84 : vector<8x128xf32>
    %cst_40 = arith.constant 0.000000e+00 : f32
    %86 = vector.broadcast %cst_40 : f32 to vector<8x128xf32>
    %87 = arith.maximumf %85, %86 : vector<8x128xf32>
    %88 = arith.truncf %87 : vector<8x128xf32> to vector<8x128xbf16>
    %89 = vector.broadcast %81 : vector<1x128xf32> to vector<8x128xf32>
    %90 = arith.addf %83, %89 : vector<8x128xf32>
    %cst_41 = arith.constant 0.000000e+00 : f32
    %91 = vector.broadcast %cst_41 : f32 to vector<8x128xf32>
    %92 = arith.maximumf %90, %91 : vector<8x128xf32>
    %93 = arith.truncf %92 : vector<8x128xf32> to vector<8x128xbf16>
    %c5 = arith.constant 5 : index
    %c0_42 = arith.constant 0 : index
    %c0_43 = arith.constant 0 : index
    %94 = vector.load %arg4[%c5, %c0_42, %c0_43] : memref<9x128x128xbf16, #tpu.memory_space<vmem>>, vector<1x128x128xbf16>
    %95 = vector.shape_cast %94 : vector<1x128x128xbf16> to vector<128x128xbf16>
    %96 = vector.extract_strided_slice %4 {offsets = [5, 0], sizes = [1, 128], strides = [1, 1]} : vector<9x128xf32> to vector<1x128xf32>
    %cst_44 = arith.constant dense<0.000000e+00> : vector<8x128xf32>
    %97 = tpu.matmul %88, %95, %cst_44 {dimension_numbers = #tpu.dot_dimension_numbers<[1], [0], [0], [1], [0, 0, 1, 1], [], []>} : vector<8x128xbf16>, vector<128x128xbf16>, vector<8x128xf32> -> vector<8x128xf32>
    %cst_45 = arith.constant dense<0.000000e+00> : vector<8x128xf32>
    %98 = tpu.matmul %93, %95, %cst_45 {dimension_numbers = #tpu.dot_dimension_numbers<[1], [0], [0], [1], [0, 0, 1, 1], [], []>} : vector<8x128xbf16>, vector<128x128xbf16>, vector<8x128xf32> -> vector<8x128xf32>
    %99 = vector.broadcast %96 : vector<1x128xf32> to vector<8x128xf32>
    %100 = arith.addf %97, %99 : vector<8x128xf32>
    %cst_46 = arith.constant 0.000000e+00 : f32
    %101 = vector.broadcast %cst_46 : f32 to vector<8x128xf32>
    %102 = arith.maximumf %100, %101 : vector<8x128xf32>
    %103 = arith.truncf %102 : vector<8x128xf32> to vector<8x128xbf16>
    %104 = vector.broadcast %96 : vector<1x128xf32> to vector<8x128xf32>
    %105 = arith.addf %98, %104 : vector<8x128xf32>
    %cst_47 = arith.constant 0.000000e+00 : f32
    %106 = vector.broadcast %cst_47 : f32 to vector<8x128xf32>
    %107 = arith.maximumf %105, %106 : vector<8x128xf32>
    %108 = arith.truncf %107 : vector<8x128xf32> to vector<8x128xbf16>
    %c6 = arith.constant 6 : index
    %c0_48 = arith.constant 0 : index
    %c0_49 = arith.constant 0 : index
    %109 = vector.load %arg4[%c6, %c0_48, %c0_49] : memref<9x128x128xbf16, #tpu.memory_space<vmem>>, vector<1x128x128xbf16>
    %110 = vector.shape_cast %109 : vector<1x128x128xbf16> to vector<128x128xbf16>
    %111 = vector.extract_strided_slice %4 {offsets = [6, 0], sizes = [1, 128], strides = [1, 1]} : vector<9x128xf32> to vector<1x128xf32>
    %cst_50 = arith.constant dense<0.000000e+00> : vector<8x128xf32>
    %112 = tpu.matmul %103, %110, %cst_50 {dimension_numbers = #tpu.dot_dimension_numbers<[1], [0], [0], [1], [0, 0, 1, 1], [], []>} : vector<8x128xbf16>, vector<128x128xbf16>, vector<8x128xf32> -> vector<8x128xf32>
    %cst_51 = arith.constant dense<0.000000e+00> : vector<8x128xf32>
    %113 = tpu.matmul %108, %110, %cst_51 {dimension_numbers = #tpu.dot_dimension_numbers<[1], [0], [0], [1], [0, 0, 1, 1], [], []>} : vector<8x128xbf16>, vector<128x128xbf16>, vector<8x128xf32> -> vector<8x128xf32>
    %114 = vector.broadcast %111 : vector<1x128xf32> to vector<8x128xf32>
    %115 = arith.addf %112, %114 : vector<8x128xf32>
    %cst_52 = arith.constant 0.000000e+00 : f32
    %116 = vector.broadcast %cst_52 : f32 to vector<8x128xf32>
    %117 = arith.maximumf %115, %116 : vector<8x128xf32>
    %118 = arith.truncf %117 : vector<8x128xf32> to vector<8x128xbf16>
    %119 = vector.broadcast %111 : vector<1x128xf32> to vector<8x128xf32>
    %120 = arith.addf %113, %119 : vector<8x128xf32>
    %cst_53 = arith.constant 0.000000e+00 : f32
    %121 = vector.broadcast %cst_53 : f32 to vector<8x128xf32>
    %122 = arith.maximumf %120, %121 : vector<8x128xf32>
    %123 = arith.truncf %122 : vector<8x128xf32> to vector<8x128xbf16>
    %c7 = arith.constant 7 : index
    %c0_54 = arith.constant 0 : index
    %c0_55 = arith.constant 0 : index
    %124 = vector.load %arg4[%c7, %c0_54, %c0_55] : memref<9x128x128xbf16, #tpu.memory_space<vmem>>, vector<1x128x128xbf16>
    %125 = vector.shape_cast %124 : vector<1x128x128xbf16> to vector<128x128xbf16>
    %126 = vector.extract_strided_slice %4 {offsets = [7, 0], sizes = [1, 128], strides = [1, 1]} : vector<9x128xf32> to vector<1x128xf32>
    %cst_56 = arith.constant dense<0.000000e+00> : vector<8x128xf32>
    %127 = tpu.matmul %118, %125, %cst_56 {dimension_numbers = #tpu.dot_dimension_numbers<[1], [0], [0], [1], [0, 0, 1, 1], [], []>} : vector<8x128xbf16>, vector<128x128xbf16>, vector<8x128xf32> -> vector<8x128xf32>
    %cst_57 = arith.constant dense<0.000000e+00> : vector<8x128xf32>
    %128 = tpu.matmul %123, %125, %cst_57 {dimension_numbers = #tpu.dot_dimension_numbers<[1], [0], [0], [1], [0, 0, 1, 1], [], []>} : vector<8x128xbf16>, vector<128x128xbf16>, vector<8x128xf32> -> vector<8x128xf32>
    %129 = vector.broadcast %126 : vector<1x128xf32> to vector<8x128xf32>
    %130 = arith.addf %127, %129 : vector<8x128xf32>
    %cst_58 = arith.constant 0.000000e+00 : f32
    %131 = vector.broadcast %cst_58 : f32 to vector<8x128xf32>
    %132 = arith.maximumf %130, %131 : vector<8x128xf32>
    %133 = arith.truncf %132 : vector<8x128xf32> to vector<8x128xbf16>
    %134 = vector.broadcast %126 : vector<1x128xf32> to vector<8x128xf32>
    %135 = arith.addf %128, %134 : vector<8x128xf32>
    %cst_59 = arith.constant 0.000000e+00 : f32
    %136 = vector.broadcast %cst_59 : f32 to vector<8x128xf32>
    %137 = arith.maximumf %135, %136 : vector<8x128xf32>
    %138 = arith.truncf %137 : vector<8x128xf32> to vector<8x128xbf16>
    %c8_60 = arith.constant 8 : index
    %c0_61 = arith.constant 0 : index
    %c0_62 = arith.constant 0 : index
    %139 = vector.load %arg4[%c8_60, %c0_61, %c0_62] : memref<9x128x128xbf16, #tpu.memory_space<vmem>>, vector<1x128x128xbf16>
    %140 = vector.shape_cast %139 : vector<1x128x128xbf16> to vector<128x128xbf16>
    %141 = vector.extract_strided_slice %4 {offsets = [8, 0], sizes = [1, 128], strides = [1, 1]} : vector<9x128xf32> to vector<1x128xf32>
    %cst_63 = arith.constant dense<0.000000e+00> : vector<8x128xf32>
    %142 = tpu.matmul %133, %140, %cst_63 {dimension_numbers = #tpu.dot_dimension_numbers<[1], [0], [0], [1], [0, 0, 1, 1], [], []>} : vector<8x128xbf16>, vector<128x128xbf16>, vector<8x128xf32> -> vector<8x128xf32>
    %cst_64 = arith.constant dense<0.000000e+00> : vector<8x128xf32>
    %143 = tpu.matmul %138, %140, %cst_64 {dimension_numbers = #tpu.dot_dimension_numbers<[1], [0], [0], [1], [0, 0, 1, 1], [], []>} : vector<8x128xbf16>, vector<128x128xbf16>, vector<8x128xf32> -> vector<8x128xf32>
    %144 = vector.broadcast %141 : vector<1x128xf32> to vector<8x128xf32>
    %145 = arith.addf %142, %144 : vector<8x128xf32>
    %cst_65 = arith.constant 0.000000e+00 : f32
    %146 = vector.broadcast %cst_65 : f32 to vector<8x128xf32>
    %147 = arith.maximumf %145, %146 : vector<8x128xf32>
    %148 = arith.truncf %147 : vector<8x128xf32> to vector<8x128xbf16>
    %149 = vector.broadcast %141 : vector<1x128xf32> to vector<8x128xf32>
    %150 = arith.addf %143, %149 : vector<8x128xf32>
    %cst_66 = arith.constant 0.000000e+00 : f32
    %151 = vector.broadcast %cst_66 : f32 to vector<8x128xf32>
    %152 = arith.maximumf %150, %151 : vector<8x128xf32>
    %153 = arith.truncf %152 : vector<8x128xf32> to vector<8x128xbf16>
    %c0_67 = arith.constant 0 : index
    %c0_68 = arith.constant 0 : index
    %154 = vector.load %arg6[%c0_67, %c0_68] : memref<128x128xbf16, #tpu.memory_space<vmem>>, vector<128x128xbf16>
    %c0_69 = arith.constant 0 : index
    %c0_70 = arith.constant 0 : index
    %155 = vector.load %arg7[%c0_69, %c0_70] : memref<1x128xf32, #tpu.memory_space<vmem>>, vector<1x128xf32>
    %cst_71 = arith.constant dense<0.000000e+00> : vector<8x128xf32>
    %156 = tpu.matmul %148, %154, %cst_71 {dimension_numbers = #tpu.dot_dimension_numbers<[1], [0], [0], [1], [0, 0, 1, 1], [], []>} : vector<8x128xbf16>, vector<128x128xbf16>, vector<8x128xf32> -> vector<8x128xf32>
    %157 = vector.broadcast %155 : vector<1x128xf32> to vector<8x128xf32>
    %158 = arith.addf %156, %157 : vector<8x128xf32>
    %cst_72 = arith.constant dense<0.000000e+00> : vector<8x128xf32>
    %159 = tpu.matmul %153, %154, %cst_72 {dimension_numbers = #tpu.dot_dimension_numbers<[1], [0], [0], [1], [0, 0, 1, 1], [], []>} : vector<8x128xbf16>, vector<128x128xbf16>, vector<8x128xf32> -> vector<8x128xf32>
    %160 = vector.broadcast %155 : vector<1x128xf32> to vector<8x128xf32>
    %161 = arith.addf %159, %160 : vector<8x128xf32>
    %162 = arith.negf %158 : vector<8x128xf32>
    %163 = math.exp %162 : vector<8x128xf32>
    %cst_73 = arith.constant 1.000000e+00 : f32
    %164 = vector.broadcast %cst_73 : f32 to vector<8x128xf32>
    %165 = arith.addf %164, %163 : vector<8x128xf32>
    %166 = arith.divf %164, %165 : vector<8x128xf32>
    %c0_74 = arith.constant 0 : index
    %c0_75 = arith.constant 0 : index
    %167 = vector.load %arg8[%c0_74, %c0_75] : memref<16x128xf32, #tpu.memory_space<vmem>>, vector<8x128xf32>
    tpu.vector_store %arg8[%c0_74, %c0_75], %166 {strides = array<i32>} : memref<16x128xf32, #tpu.memory_space<vmem>>, vector<8x128xf32>,
    %168 = arith.negf %161 : vector<8x128xf32>
    %169 = math.exp %168 : vector<8x128xf32>
    %cst_76 = arith.constant 1.000000e+00 : f32
    %170 = vector.broadcast %cst_76 : f32 to vector<8x128xf32>
    %171 = arith.addf %170, %169 : vector<8x128xf32>
    %172 = arith.divf %170, %171 : vector<8x128xf32>
    %c8_77 = arith.constant 8 : index
    %c0_78 = arith.constant 0 : index
    %173 = vector.load %arg8[%c8_77, %c0_78] : memref<16x128xf32, #tpu.memory_space<vmem>>, vector<8x128xf32>
    tpu.vector_store %arg8[%c8_77, %c0_78], %172 {strides = array<i32>} : memref<16x128xf32, #tpu.memory_space<vmem>>, vector<8x128xf32>,
    return
  }
  func.func @transform_0(%arg0: i32) -> (i32, i32) {
    %c0_i32 = arith.constant 0 : i32
    %c0_i32_0 = arith.constant 0 : i32
    return %arg0, %c0_i32 : i32, i32
  }
  func.func @transform_1(%arg0: i32) -> (i32, i32) {
    %c0_i32 = arith.constant 0 : i32
    %c0_i32_0 = arith.constant 0 : i32
    %c0_i32_1 = arith.constant 0 : i32
    return %c0_i32, %c0_i32_0 : i32, i32
  }
  func.func @transform_2(%arg0: i32) -> (i32, i32) {
    %c0_i32 = arith.constant 0 : i32
    %c0_i32_0 = arith.constant 0 : i32
    %c0_i32_1 = arith.constant 0 : i32
    return %c0_i32, %c0_i32_0 : i32, i32
  }
  func.func @transform_3(%arg0: i32) -> (i32, i32, i32) {
    %c0_i32 = arith.constant 0 : i32
    %c0_i32_0 = arith.constant 0 : i32
    %c0_i32_1 = arith.constant 0 : i32
    %c0_i32_2 = arith.constant 0 : i32
    return %c0_i32, %c0_i32_0, %c0_i32_1 : i32, i32, i32
  }
  func.func @transform_4(%arg0: i32) -> (i32, i32) {
    %c0_i32 = arith.constant 0 : i32
    %c0_i32_0 = arith.constant 0 : i32
    %c0_i32_1 = arith.constant 0 : i32
    return %c0_i32, %c0_i32_0 : i32, i32
  }
  func.func @transform_5(%arg0: i32) -> (i32, i32) {
    %c0_i32 = arith.constant 0 : i32
    %c0_i32_0 = arith.constant 0 : i32
    %c0_i32_1 = arith.constant 0 : i32
    return %c0_i32, %c0_i32_0 : i32, i32
  }
  func.func @transform_6(%arg0: i32) -> (i32, i32) {
    %c0_i32 = arith.constant 0 : i32
    %c0_i32_0 = arith.constant 0 : i32
    %c0_i32_1 = arith.constant 0 : i32
    return %c0_i32, %c0_i32_0 : i32, i32
  }
  func.func @transform_7(%arg0: i32) -> (i32, i32) {
    %c0_i32 = arith.constant 0 : i32
    %c0_i32_0 = arith.constant 0 : i32
    return %arg0, %c0_i32 : i32, i32
  }
}

</mosaic_0001>

<bundles_post_ra>
// kernel: tpu_custom_call.1
= control target key start
LH: loop header
LB: loop body
LE: loop exit
PB: predicated region body
PF: predicated region fallthrough
CT: control target
= control target key end

     0   :  { %12 = vsyncpa [#allocation3], 0  ;;  %s3184_s0 = inlined_call_operand.hbm [shape: f32[16,128], index: 0, kind: input, shape index: {}]   ;;  %s3185_s1 = inlined_call_operand.hbm [shape: bf16[128,128], index: 1, kind: input, shape index: {}]   ;;  %s3186_s2 = inlined_call_operand.vmem [shape: f32[1,128], index: 2, kind: input, shape index: {}]   ;;  %s3187_s3 = inlined_call_operand.hbm [shape: bf16[9,128,128], index: 3, kind: input, shape index: {}]   ;;  %s3188_s4 = inlined_call_operand.hbm [shape: f32[9,128], index: 4, kind: input, shape index: {}]   ;;  %s3189_s5 = inlined_call_operand.hbm [shape: bf16[128,128], index: 5, kind: input, shape index: {}]   ;;  %s3190_s6 = inlined_call_operand.vmem [shape: f32[1,128], index: 6, kind: input, shape index: {}]   ;;  %s3191_s7 = inlined_call_operand.hbm [shape: f32[16,128], index: 7, kind: output, shape index: {}]  }
   0x1   :  { %13 = vsyncpa [#allocation6], 0 }
   0x2   :  { %14 = vsyncpa [#allocation9], 0 }
   0x3   :  { %15 = vsyncpa [#allocation4], 0  ;;  %s2796_s24 = smov [#allocation5]   ;;  %s2656_s28 = scalar_lea.hbm %s3185_s1, 1024 }
   0x4   :  { %s33_s25 = sshll.u32 %s2796_s24, 4  ;;  %p2657_p0 = scmp.ne.s32.totalorder %s3185_s1, %s2656_s28  ;;  %s34_s25 = int_to_ptr.vmem [resolvable:$true] %s33_s25 }
   0x5   :  { %p2660_p1 = scmp.lt.u32.totalorder %s2656_s28, %s3185_s1 }
   0x7   :  { %p2662_p2 = pnand %p2660_p1, %p2657_p0 }
   0x9   :  { %2665 = shalt.err (!%p2662_p2)
}
   0xa   :  { %s2666_s10 = scalar_lea.vmem %s34_s25, 1024  ;;  %p2671_p4 = scmp.lt.s32.totalorder %s34_s25, %s34_s25 }
   0xb   :  { %p2667_p3 = scmp.ne.s32.totalorder %s34_s25, %s2666_s10  ;;  %p2672_p5 = scmp.lt.s32.totalorder %s2666_s10, %s2666_s10 }
   0xd   :  { %p2673_p6 = por %p2672_p5, %p2671_p4 }
   0xf   :  { %p2674_p7 = pnand %p2673_p6, %p2667_p3 }
  0x11   :  { %2677 = shalt.err (!%p2674_p7)
}
  0x12   :  { %s2797_s11 = smov 64   ;;  %s2798_s12 = smov 4  }
  0x13   :  { %39 = dma.hbm_to_vmem [thread:$0]  %s3185_s1, 1024, %s34_s25, [#allocation6], %s2797_s11, %s2797_s11, %s2798_s12  }
  0x14   :  { %s2799_s15 = smov [#allocation8]   ;;  %s2800_s17 = smov [#allocation2]  }
  0x15   :  { %s59_s16 = sshll.u32 %s2799_s15, 4  ;;  %s21_s18 = sshll.u32 %s2800_s17, 4  ;;  %s60_s16 = int_to_ptr.vmem [resolvable:$true] %s59_s16  ;;  %s22_s18 = int_to_ptr.vmem [resolvable:$true] %s21_s18 }
  0x16   :  { %s2678_s21 = scalar_lea.hbm %s3188_s4, 256 }
  0x17   :  { %p2679_p8 = scmp.ne.s32.totalorder %s3188_s4, %s2678_s21  ;;  %p2682_p9 = scmp.lt.u32.totalorder %s2678_s21, %s3188_s4 }
  0x19   :  { %p2684_p10 = pnand %p2682_p9, %p2679_p8 }
  0x1b   :  { %2687 = shalt.err (!%p2684_p10)
}
  0x1c   :  { %s2688_s1 = scalar_lea.vmem %s60_s16, 256  ;;  %p2693_p12 = scmp.lt.s32.totalorder %s60_s16, %s60_s16 }
  0x1d   :  { %p2689_p11 = scmp.ne.s32.totalorder %s60_s16, %s2688_s1  ;;  %p2694_p13 = scmp.lt.s32.totalorder %s2688_s1, %s2688_s1 }
  0x1f   :  { %p2695_p0 = por %p2694_p13, %p2693_p12 }
  0x21   :  { %p2696_p1 = pnand %p2695_p0, %p2689_p11 }
  0x23   :  { %2699 = shalt.err (!%p2696_p1)
}
  0x24   :  { %s2801_s25 = smov 128   ;;  %s2802_s27 = smov 8  }
  0x25   :  { %65 = dma.hbm_to_vmem [thread:$0]  %s3188_s4, 256, %s60_s16, [#allocation9], %s2801_s25, %s2801_s25, %s2802_s27  }
  0x26   :  { %s2700_s9 = scalar_lea.hbm %s3184_s0, 256 }
  0x27   :  { %p2701_p2 = scmp.ne.s32.totalorder %s3184_s0, %s2700_s9  ;;  %p2704_p3 = scmp.lt.u32.totalorder %s2700_s9, %s3184_s0 }
  0x29   :  { %p2706_p4 = pnand %p2704_p3, %p2701_p2 }
  0x2b   :  { %2709 = shalt.err (!%p2706_p4)
}
  0x2c   :  { %s2710_s17 = scalar_lea.vmem %s22_s18, 256  ;;  %p2715_p6 = scmp.lt.s32.totalorder %s22_s18, %s22_s18 }
  0x2d   :  { %p2711_p5 = scmp.ne.s32.totalorder %s22_s18, %s2710_s17  ;;  %p2716_p7 = scmp.lt.s32.totalorder %s2710_s17, %s2710_s17 }
  0x2f   :  { %p2717_p8 = por %p2716_p7, %p2715_p6 }
  0x31   :  { %p2718_p9 = pnand %p2717_p8, %p2711_p5 }
  0x33   :  { %2721 = shalt.err (!%p2718_p9)
}
  0x34   :  { %27 = dma.hbm_to_vmem [thread:$0]  %s3184_s0, 256, %s22_s18, [#allocation3], %s2801_s25, %s2801_s25, %s2802_s27  }
  0x35   :  { %s2803_s19 = smov [#allocation7]   ;;  %s2804_s21 = smov [#allocation10]  }
  0x36   :  { %s47_s20 = sshll.u32 %s2803_s19, 4  ;;  %s71_s22 = sshll.u32 %s2804_s21, 4  ;;  %s48_s20 = int_to_ptr.vmem [resolvable:$true] %s47_s20  ;;  %s72_s22 = int_to_ptr.vmem [resolvable:$true] %s71_s22 }
  0x37   :  { %s2722_s26 = scalar_lea.hbm %s3187_s3, 9216 }
  0x38   :  { %p2723_p10 = scmp.ne.s32.totalorder %s3187_s3, %s2722_s26  ;;  %p2726_p11 = scmp.lt.u32.totalorder %s2722_s26, %s3187_s3 }
  0x3a   :  { %p2728_p12 = pnand %p2726_p11, %p2723_p10 }
  0x3c   :  { %2731 = shalt.err (!%p2728_p12)
}
  0x3d   :  { %s2732_s0 = scalar_lea.vmem %s48_s20, 9216  ;;  %p2737_p0 = scmp.lt.s32.totalorder %s48_s20, %s48_s20 }
  0x3e   :  { %p2733_p13 = scmp.ne.s32.totalorder %s48_s20, %s2732_s0  ;;  %p2738_p1 = scmp.lt.s32.totalorder %s2732_s0, %s2732_s0 }
  0x40   :  { %p2739_p2 = por %p2738_p1, %p2737_p0 }
  0x42   :  { %p2740_p3 = pnand %p2739_p2, %p2733_p13 }
  0x44   :  { %2743 = shalt.err (!%p2740_p3)
}
  0x45   :  { %53 = dma.hbm_to_vmem [thread:$0]  %s3187_s3, 9216, %s48_s20, [#allocation6], %s2797_s11, %s2797_s11, %s2798_s12  }
  0x46   :  { %s2744_s13 = scalar_lea.hbm %s3189_s5, 1024 }
  0x47   :  { %p2745_p4 = scmp.ne.s32.totalorder %s3189_s5, %s2744_s13  ;;  %p2748_p5 = scmp.lt.u32.totalorder %s2744_s13, %s3189_s5 }
  0x49   :  { %p2750_p6 = pnand %p2748_p5, %p2745_p4 }
  0x4b   :  { %2753 = shalt.err (!%p2750_p6)
}
  0x4c   :  { %s2754_s16 = scalar_lea.vmem %s72_s22, 1024  ;;  %p2759_p8 = scmp.lt.s32.totalorder %s72_s22, %s72_s22 }
  0x4d   :  { %p2755_p7 = scmp.ne.s32.totalorder %s72_s22, %s2754_s16  ;;  %p2760_p9 = scmp.lt.s32.totalorder %s2754_s16, %s2754_s16 }
  0x4f   :  { %p2761_p10 = por %p2760_p9, %p2759_p8 }
  0x51   :  { %p2762_p11 = pnand %p2761_p10, %p2755_p7 }
  0x53   :  { %2765 = shalt.err (!%p2762_p11)
}
  0x54   :  { %77 = dma.hbm_to_vmem [thread:$0]  %s3189_s5, 1024, %s72_s22, [#allocation9], %s2797_s11, %s2797_s11, %s2798_s12  }
  0x55   :  { %2788 = dma.done.wait [#allocation3], 256  }
  0x56   :  { %2789 = vsyncadd [#allocation3], 4294967040 }
  0x57   :  { %2790 = dma.done.wait [#allocation6], 10240  }
  0x58   :  { %2791 = vsyncadd [#allocation6], 4294957056 }
  0x59   :  { %2792 = dma.done.wait [#allocation9], 1280  }
  0x5a   :  { %2793 = vsyncadd [#allocation9], 4294966016  ;;  %v2805_v0 = vmov 0.0   ;;  %vm2806_vm0 = vmmov 0   ;;  %v2560_v1 = vld [vmem:[#allocation5] sm:$0xff]   ;;  %v2561_v2 = vld [vmem:[#allocation5 + $0x8] sm:$0xff]   ;;  %v273_v44 = vlaneseq }
  0x5b   :  { %2108 = vmatprep.subr.bf16.mxu0 %v2805_v0  ;;  %2128 = vmatprep.subr.bf16.mxu1 %v2805_v0  ;;  %v2562_v3 = vld [vmem:[#allocation5 + $0x10] sm:$0xff]   ;;  %v2563_v4 = vld [vmem:[#allocation5 + $0x18] sm:$0xff]   ;;  %v2564_v5 = vld [vmem:[#allocation5 + $0x20] sm:$0xff]  }
  0x5c   :  { %2124 = vmatprep.mubr.msk.bf16.mxu0 %vm2806_vm0, %v2805_v0  ;;  %2144 = vmatprep.mubr.msk.bf16.mxu1 %vm2806_vm0, %v2805_v0  ;;  %v2565_v6 = vld [vmem:[#allocation5 + $0x28] sm:$0xff]   ;;  %v2566_v7 = vld [vmem:[#allocation5 + $0x30] sm:$0xff]   ;;  %v2567_v8 = vld [vmem:[#allocation5 + $0x38] sm:$0xff]   ;;  %v2988_v45 = vshrl.u32 %v273_v44, 7 }
  0x5d   :  { %2109 = vmatpush3.bf16.msra.mxu0 %v2560_v1  ;;  %2129 = vmatpush3.bf16.msra.mxu1 %v2560_v1  ;;  %v96_v9 = vld [vmem:[#allocation2] sm:$0xff]  ;;  %v98_v10 = vld [vmem:[#allocation2 + $0x8] sm:$0xff]  ;;  %v2568_v11 = vld [vmem:[#allocation7] sm:$0xff]  }
  0x5e   :  { %2110 = vmatprep.subr.bf16.mxu0 %v2805_v0  ;;  %2130 = vmatprep.subr.bf16.mxu1 %v2805_v0  ;;  %v97_v12 = vpack.c.bf16 %v96_v9, %v96_v9  ;;  %v99_v13 = vpack.c.bf16 %v98_v10, %v98_v10  ;;  %v2569_v14 = vld [vmem:[#allocation7 + $0x8] sm:$0xff]   ;;  %v2570_v15 = vld [vmem:[#allocation7 + $0x10] sm:$0xff]   ;;  %v2571_v16 = vld [vmem:[#allocation7 + $0x18] sm:$0xff]   ;;  %v275_v46 = vsub.s32 0, %v2988_v45 }
  0x5f   :  { %v2572_v17 = vld [vmem:[#allocation7 + $0x20] sm:$0xff]   ;;  %v2573_v18 = vld [vmem:[#allocation7 + $0x28] sm:$0xff]   ;;  %v2574_v19 = vld [vmem:[#allocation7 + $0x30] sm:$0xff]  }
  0x60   :  { %v2575_v20 = vld [vmem:[#allocation7 + $0x38] sm:$0xff]   ;;  %v1817_v21 = vld [vmem:[%s3186_s2] ss:$0 sm:$0xff]  ;;  %v2576_v34 = vld [vmem:[#allocation7 + $0x40] sm:$0xff]  }
  0x61   :  { %2111 = vmatpush3.bf16.msra.mxu0 %v2561_v2  ;;  %2131 = vmatpush3.bf16.msra.mxu1 %v2561_v2  ;;  %v2577_v37 = vld [vmem:[#allocation7 + $0x48] sm:$0xff]   ;;  %v2578_v38 = vld [vmem:[#allocation7 + $0x50] sm:$0xff]   ;;  %v2579_v39 = vld [vmem:[#allocation7 + $0x58] sm:$0xff]  }
  0x62   :  { %2112 = vmatprep.subr.bf16.mxu0 %v2805_v0  ;;  %2132 = vmatprep.subr.bf16.mxu1 %v2805_v0  ;;  %v2580_v40 = vld [vmem:[#allocation7 + $0x60] sm:$0xff]   ;;  %v2581_v41 = vld [vmem:[#allocation7 + $0x68] sm:$0xff]   ;;  %v2582_v42 = vld [vmem:[#allocation7 + $0x70] sm:$0xff]  }
  0x63   :  { %v2583_v43 = vld [vmem:[#allocation7 + $0x78] sm:$0xff]   ;;  %v2991_v47 = vld [vmem:[#allocation8] sm:$0xff]  ;;  %v2585_v1 = vld [vmem:[#allocation7 + $0x88] sm:$0xff]  }
  0x64   :  { %v276_v48 = vrot.slane %v2991_v47, %v275_v46  ;;  %v2584_v61 = vld [vmem:[#allocation7 + $0x80] sm:$0xff]   ;;  %v2586_v2 = vld [vmem:[#allocation7 + $0x90] sm:$0xff]  }
  0x65   :  { %2113 = vmatpush3.bf16.msra.mxu0 %v2562_v3  ;;  %2133 = vmatpush3.bf16.msra.mxu1 %v2562_v3  ;;  %v2587_v3 = vld [vmem:[#allocation7 + $0x98] sm:$0xff]  }
  0x66   :  { %2114 = vmatprep.subr.bf16.mxu0 %v2805_v0  ;;  %2134 = vmatprep.subr.bf16.mxu1 %v2805_v0 }
  0x69   :  { %2115 = vmatpush3.bf16.msra.mxu0 %v2563_v4  ;;  %2135 = vmatpush3.bf16.msra.mxu1 %v2563_v4  ;;  %v2588_v4 = vld [vmem:[#allocation7 + $0xa0] sm:$0xff]  }
  0x6a   :  { %2116 = vmatprep.subr.bf16.mxu0 %v2805_v0  ;;  %2136 = vmatprep.subr.bf16.mxu1 %v2805_v0 }
  0x6d   :  { %2117 = vmatpush3.bf16.msra.mxu0 %v2564_v5  ;;  %2137 = vmatpush3.bf16.msra.mxu1 %v2564_v5  ;;  %v2589_v5 = vld [vmem:[#allocation7 + $0xa8] sm:$0xff]  }
  0x6e   :  { %2118 = vmatprep.subr.bf16.mxu0 %v2805_v0  ;;  %2138 = vmatprep.subr.bf16.mxu1 %v2805_v0 }
  0x71   :  { %2119 = vmatpush3.bf16.msra.mxu0 %v2565_v6  ;;  %2139 = vmatpush3.bf16.msra.mxu1 %v2565_v6  ;;  %v2590_v6 = vld [vmem:[#allocation7 + $0xb0] sm:$0xff]  }
  0x72   :  { %2120 = vmatprep.subr.bf16.mxu0 %v2805_v0  ;;  %2140 = vmatprep.subr.bf16.mxu1 %v2805_v0 }
  0x75   :  { %2121 = vmatpush3.bf16.msra.mxu0 %v2566_v7  ;;  %2141 = vmatpush3.bf16.msra.mxu1 %v2566_v7  ;;  %v2591_v7 = vld [vmem:[#allocation7 + $0xb8] sm:$0xff]  }
  0x76   :  { %2122 = vmatprep.subr.bf16.mxu0 %v2805_v0  ;;  %2142 = vmatprep.subr.bf16.mxu1 %v2805_v0 }
  0x79   :  { %2123 = vmatpush3.bf16.msra.mxu0 %v2567_v8  ;;  %2143 = vmatpush3.bf16.msra.mxu1 %v2567_v8  ;;  %v428_v8 = vsub.s32 1, %v2988_v45 }
  0x7a   :  { %2148 = vmatprep.subr.bf16.mxu0 %v2805_v0  ;;  %2168 = vmatprep.subr.bf16.mxu1 %v2805_v0 }
  0x7b   :  { %v429_v9 = vrot.slane %v2991_v47, %v428_v8 }
  0x7c   :  { %2125 = vmatmul.mubr.bf16.vlgmr.msra.gmra.mrb[0].mxu0 %v97_v12  ;;  %2145 = vmatmul.mubr.bf16.vlgmr.msra.gmra.mrb[0].mxu1 %v99_v13 }
  0x7d   :  { %2149 = vmatpush3.bf16.msra.mxu0 %v2568_v11  ;;  %2169 = vmatpush3.bf16.msra.mxu1 %v2568_v11 }
  0x7e   :  { %2150 = vmatprep.subr.bf16.mxu0 %v2805_v0  ;;  %2170 = vmatprep.subr.bf16.mxu1 %v2805_v0 }
  0x7f   :  { %2164 = vmatprep.mubr.msk.bf16.mxu0 %vm2806_vm0, %v2805_v0  ;;  %2184 = vmatprep.mubr.msk.bf16.mxu1 %vm2806_vm0, %v2805_v0 }
  0x81   :  { %2151 = vmatpush3.bf16.msra.mxu0 %v2569_v14  ;;  %2171 = vmatpush3.bf16.msra.mxu1 %v2569_v14 }
  0x82   :  { %2152 = vmatprep.subr.bf16.mxu0 %v2805_v0  ;;  %2172 = vmatprep.subr.bf16.mxu1 %v2805_v0 }
  0x85   :  { %2153 = vmatpush3.bf16.msra.mxu0 %v2570_v15  ;;  %2173 = vmatpush3.bf16.msra.mxu1 %v2570_v15 }
  0x86   :  { %2154 = vmatprep.subr.bf16.mxu0 %v2805_v0  ;;  %2174 = vmatprep.subr.bf16.mxu1 %v2805_v0 }
  0x89   :  { %2155 = vmatpush3.bf16.msra.mxu0 %v2571_v16  ;;  %2175 = vmatpush3.bf16.msra.mxu1 %v2571_v16 }
  0x8a   :  { %2156 = vmatprep.subr.bf16.mxu0 %v2805_v0  ;;  %2176 = vmatprep.subr.bf16.mxu1 %v2805_v0 }
  0x8d   :  { %2157 = vmatpush3.bf16.msra.mxu0 %v2572_v17  ;;  %2177 = vmatpush3.bf16.msra.mxu1 %v2572_v17 }
  0x8e   :  { %2158 = vmatprep.subr.bf16.mxu0 %v2805_v0  ;;  %2178 = vmatprep.subr.bf16.mxu1 %v2805_v0 }
  0x91   :  { %2159 = vmatpush3.bf16.msra.mxu0 %v2573_v18  ;;  %2179 = vmatpush3.bf16.msra.mxu1 %v2573_v18 }
  0x92   :  { %2160 = vmatprep.subr.bf16.mxu0 %v2805_v0  ;;  %2180 = vmatprep.subr.bf16.mxu1 %v2805_v0 }
  0x95   :  { %2161 = vmatpush3.bf16.msra.mxu0 %v2574_v19  ;;  %2181 = vmatpush3.bf16.msra.mxu1 %v2574_v19 }
  0x96   :  { %2162 = vmatprep.subr.bf16.mxu0 %v2805_v0  ;;  %2182 = vmatprep.subr.bf16.mxu1 %v2805_v0 }
  0x99   :  { %2163 = vmatpush3.bf16.msra.mxu0 %v2575_v20  ;;  %2183 = vmatpush3.bf16.msra.mxu1 %v2575_v20 }
  0x9a   :  { %2188 = vmatprep.subr.bf16.mxu0 %v2805_v0  ;;  %2208 = vmatprep.subr.bf16.mxu1 %v2805_v0 }
 0x14f   :  { %v207_v22 = vpop.f32.mrb[0].mxu0  ;;  %v249_v23 = vpop.f32.mrb[0].mxu1 }
 0x150   :  { %v208_v24 = vadd.f32 %v1817_v21, %v207_v22  ;;  %v250_v25 = vadd.f32 %v1817_v21, %v249_v23  ;;  %v2126_v26 = vpop.f32.mrb[1].mxu0  ;;  %v2146_v27 = vpop.f32.mrb[1].mxu1  ;;  %v2592_v22 = vld [vmem:[#allocation7 + $0xc0] sm:$0xff]  }
 0x151   :  { %v210_v28 = vpop.f32.mrb[2].mxu0  ;;  %v252_v29 = vpop.f32.mrb[2].mxu1  ;;  %v2594_v26 = vld [vmem:[#allocation7 + $0xd0] sm:$0xff]   ;;  %v2595_v27 = vld [vmem:[#allocation7 + $0xd8] sm:$0xff]  }
 0x152   :  { %v213_v30 = vmax.f32 %v208_v24, 0.0  ;;  %v255_v31 = vmax.f32 %v250_v25, 0.0  ;;  %v2127_v32 = vpop.f32.mrb[3].mxu0  ;;  %v2147_v33 = vpop.f32.mrb[3].mxu1  ;;  %v2593_v25 = vld [vmem:[#allocation7 + $0xc8] sm:$0xff]   ;;  %v2596_v28 = vld [vmem:[#allocation7 + $0xe0] sm:$0xff]  }
 0x153   :  { %v2597_v29 = vld [vmem:[#allocation7 + $0xe8] sm:$0xff]   ;;  %v581_v32 = vsub.s32 2, %v2988_v45 }
 0x154   :  { %v214_v35 = vpack.c.bf16 %v213_v30, %v213_v30  ;;  %v256_v36 = vpack.c.bf16 %v255_v31, %v255_v31  ;;  %v2598_v30 = vld [vmem:[#allocation7 + $0xf0] sm:$0xff]   ;;  %v2599_v31 = vld [vmem:[#allocation7 + $0xf8] sm:$0xff]  }
 0x155   :  { %v582_v33 = vrot.slane %v2991_v47, %v581_v32 }
 0x156   :  { %2165 = vmatmul.mubr.bf16.vlgmr.msra.gmra.mrb[4].mxu0 %v214_v35  ;;  %2185 = vmatmul.mubr.bf16.vlgmr.msra.gmra.mrb[4].mxu1 %v256_v36 }
 0x157   :  { %2189 = vmatpush3.bf16.msra.mxu0 %v2576_v34  ;;  %2209 = vmatpush3.bf16.msra.mxu1 %v2576_v34 }
 0x158   :  { %2190 = vmatprep.subr.bf16.mxu0 %v2805_v0  ;;  %2210 = vmatprep.subr.bf16.mxu1 %v2805_v0 }
 0x159   :  { %2204 = vmatprep.mubr.msk.bf16.mxu0 %vm2806_vm0, %v2805_v0  ;;  %2224 = vmatprep.mubr.msk.bf16.mxu1 %vm2806_vm0, %v2805_v0 }
 0x15b   :  { %2191 = vmatpush3.bf16.msra.mxu0 %v2577_v37  ;;  %2211 = vmatpush3.bf16.msra.mxu1 %v2577_v37 }
 0x15c   :  { %2192 = vmatprep.subr.bf16.mxu0 %v2805_v0  ;;  %2212 = vmatprep.subr.bf16.mxu1 %v2805_v0 }
 0x15f   :  { %2193 = vmatpush3.bf16.msra.mxu0 %v2578_v38  ;;  %2213 = vmatpush3.bf16.msra.mxu1 %v2578_v38 }
 0x160   :  { %2194 = vmatprep.subr.bf16.mxu0 %v2805_v0  ;;  %2214 = vmatprep.subr.bf16.mxu1 %v2805_v0 }
 0x163   :  { %2195 = vmatpush3.bf16.msra.mxu0 %v2579_v39  ;;  %2215 = vmatpush3.bf16.msra.mxu1 %v2579_v39 }
 0x164   :  { %2196 = vmatprep.subr.bf16.mxu0 %v2805_v0  ;;  %2216 = vmatprep.subr.bf16.mxu1 %v2805_v0 }
 0x167   :  { %2197 = vmatpush3.bf16.msra.mxu0 %v2580_v40  ;;  %2217 = vmatpush3.bf16.msra.mxu1 %v2580_v40 }
 0x168   :  { %2198 = vmatprep.subr.bf16.mxu0 %v2805_v0  ;;  %2218 = vmatprep.subr.bf16.mxu1 %v2805_v0 }
 0x16b   :  { %2199 = vmatpush3.bf16.msra.mxu0 %v2581_v41  ;;  %2219 = vmatpush3.bf16.msra.mxu1 %v2581_v41 }
 0x16c   :  { %2200 = vmatprep.subr.bf16.mxu0 %v2805_v0  ;;  %2220 = vmatprep.subr.bf16.mxu1 %v2805_v0 }
 0x16f   :  { %2201 = vmatpush3.bf16.msra.mxu0 %v2582_v42  ;;  %2221 = vmatpush3.bf16.msra.mxu1 %v2582_v42 }
 0x170   :  { %2202 = vmatprep.subr.bf16.mxu0 %v2805_v0  ;;  %2222 = vmatprep.subr.bf16.mxu1 %v2805_v0 }
 0x173   :  { %2203 = vmatpush3.bf16.msra.mxu0 %v2583_v43  ;;  %2223 = vmatpush3.bf16.msra.mxu1 %v2583_v43 }
 0x174   :  { %2228 = vmatprep.subr.bf16.mxu0 %v2805_v0  ;;  %2248 = vmatprep.subr.bf16.mxu1 %v2805_v0 }
 0x229   :  { %v359_v49 = vpop.f32.mrb[4].mxu0  ;;  %v401_v50 = vpop.f32.mrb[4].mxu1 }
 0x22a   :  { %v360_v51 = vadd.f32 %v359_v49, %v276_v48  ;;  %v402_v52 = vadd.f32 %v401_v50, %v276_v48  ;;  %v2166_v53 = vpop.f32.mrb[5].mxu0  ;;  %v2186_v54 = vpop.f32.mrb[5].mxu1  ;;  %v2600_v48 = vld [vmem:[#allocation7 + $0x100] sm:$0xff]  }
 0x22b   :  { %v362_v55 = vpop.f32.mrb[6].mxu0  ;;  %v404_v56 = vpop.f32.mrb[6].mxu1  ;;  %v2603_v53 = vld [vmem:[#allocation7 + $0x118] sm:$0xff]   ;;  %v2604_v54 = vld [vmem:[#allocation7 + $0x120] sm:$0xff]  }
 0x22c   :  { %v365_v57 = vmax.f32 %v360_v51, 0.0  ;;  %v407_v58 = vmax.f32 %v402_v52, 0.0  ;;  %v2167_v59 = vpop.f32.mrb[7].mxu0  ;;  %v2187_v60 = vpop.f32.mrb[7].mxu1  ;;  %v2601_v51 = vld [vmem:[#allocation7 + $0x108] sm:$0xff]   ;;  %v2602_v52 = vld [vmem:[#allocation7 + $0x110] sm:$0xff]  }
 0x22d   :  { %v2605_v55 = vld [vmem:[#allocation7 + $0x128] sm:$0xff]   ;;  %v2606_v56 = vld [vmem:[#allocation7 + $0x130] sm:$0xff]  }
 0x22e   :  { %v366_v62 = vpack.c.bf16 %v365_v57, %v365_v57  ;;  %v408_v63 = vpack.c.bf16 %v407_v58, %v407_v58  ;;  %v2607_v57 = vld [vmem:[#allocation7 + $0x138] sm:$0xff]   ;;  %v734_v58 = vsub.s32 3, %v2988_v45 }
 0x230   :  { %2205 = vmatmul.mubr.bf16.vlgmr.msra.gmra.mrb[8].mxu0 %v366_v62  ;;  %2225 = vmatmul.mubr.bf16.vlgmr.msra.gmra.mrb[8].mxu1 %v408_v63  ;;  %v735_v59 = vrot.slane %v2991_v47, %v734_v58 }
 0x231   :  { %2229 = vmatpush3.bf16.msra.mxu0 %v2584_v61  ;;  %2249 = vmatpush3.bf16.msra.mxu1 %v2584_v61 }
 0x232   :  { %2230 = vmatprep.subr.bf16.mxu0 %v2805_v0  ;;  %2250 = vmatprep.subr.bf16.mxu1 %v2805_v0 }
 0x233   :  { %2244 = vmatprep.mubr.msk.bf16.mxu0 %vm2806_vm0, %v2805_v0  ;;  %2264 = vmatprep.mubr.msk.bf16.mxu1 %vm2806_vm0, %v2805_v0 }
 0x235   :  { %2231 = vmatpush3.bf16.msra.mxu0 %v2585_v1  ;;  %2251 = vmatpush3.bf16.msra.mxu1 %v2585_v1 }
 0x236   :  { %2232 = vmatprep.subr.bf16.mxu0 %v2805_v0  ;;  %2252 = vmatprep.subr.bf16.mxu1 %v2805_v0 }
 0x239   :  { %2233 = vmatpush3.bf16.msra.mxu0 %v2586_v2  ;;  %2253 = vmatpush3.bf16.msra.mxu1 %v2586_v2 }
 0x23a   :  { %2234 = vmatprep.subr.bf16.mxu0 %v2805_v0  ;;  %2254 = vmatprep.subr.bf16.mxu1 %v2805_v0 }
 0x23d   :  { %2235 = vmatpush3.bf16.msra.mxu0 %v2587_v3  ;;  %2255 = vmatpush3.bf16.msra.mxu1 %v2587_v3 }
 0x23e   :  { %2236 = vmatprep.subr.bf16.mxu0 %v2805_v0  ;;  %2256 = vmatprep.subr.bf16.mxu1 %v2805_v0 }
 0x241   :  { %2237 = vmatpush3.bf16.msra.mxu0 %v2588_v4  ;;  %2257 = vmatpush3.bf16.msra.mxu1 %v2588_v4 }
 0x242   :  { %2238 = vmatprep.subr.bf16.mxu0 %v2805_v0  ;;  %2258 = vmatprep.subr.bf16.mxu1 %v2805_v0 }
 0x245   :  { %2239 = vmatpush3.bf16.msra.mxu0 %v2589_v5  ;;  %2259 = vmatpush3.bf16.msra.mxu1 %v2589_v5 }
 0x246   :  { %2240 = vmatprep.subr.bf16.mxu0 %v2805_v0  ;;  %2260 = vmatprep.subr.bf16.mxu1 %v2805_v0 }
 0x249   :  { %2241 = vmatpush3.bf16.msra.mxu0 %v2590_v6  ;;  %2261 = vmatpush3.bf16.msra.mxu1 %v2590_v6 }
 0x24a   :  { %2242 = vmatprep.subr.bf16.mxu0 %v2805_v0  ;;  %2262 = vmatprep.subr.bf16.mxu1 %v2805_v0 }
 0x24d   :  { %2243 = vmatpush3.bf16.msra.mxu0 %v2591_v7  ;;  %2263 = vmatpush3.bf16.msra.mxu1 %v2591_v7 }
 0x24e   :  { %2268 = vmatprep.subr.bf16.mxu0 %v2805_v0  ;;  %2288 = vmatprep.subr.bf16.mxu1 %v2805_v0 }
 0x303   :  { %v512_v10 = vpop.f32.mrb[8].mxu0  ;;  %v554_v11 = vpop.f32.mrb[8].mxu1 }
 0x304   :  { %v513_v12 = vadd.f32 %v512_v10, %v429_v9  ;;  %v555_v13 = vadd.f32 %v554_v11, %v429_v9  ;;  %v2206_v14 = vpop.f32.mrb[9].mxu0  ;;  %v2226_v15 = vpop.f32.mrb[9].mxu1  ;;  %v2608_v9 = vld [vmem:[#allocation7 + $0x140] sm:$0xff]  }
 0x305   :  { %v515_v16 = vpop.f32.mrb[10].mxu0  ;;  %v557_v17 = vpop.f32.mrb[10].mxu1  ;;  %v2611_v14 = vld [vmem:[#allocation7 + $0x158] sm:$0xff]   ;;  %v2612_v15 = vld [vmem:[#allocation7 + $0x160] sm:$0xff]  }
 0x306   :  { %v518_v18 = vmax.f32 %v513_v12, 0.0  ;;  %v560_v19 = vmax.f32 %v555_v13, 0.0  ;;  %v2207_v20 = vpop.f32.mrb[11].mxu0  ;;  %v2227_v21 = vpop.f32.mrb[11].mxu1  ;;  %v2609_v12 = vld [vmem:[#allocation7 + $0x148] sm:$0xff]   ;;  %v2610_v13 = vld [vmem:[#allocation7 + $0x150] sm:$0xff]  }
 0x307   :  { %v2613_v16 = vld [vmem:[#allocation7 + $0x168] sm:$0xff]   ;;  %v2614_v17 = vld [vmem:[#allocation7 + $0x170] sm:$0xff]  }
 0x308   :  { %v519_v23 = vpack.c.bf16 %v518_v18, %v518_v18  ;;  %v561_v24 = vpack.c.bf16 %v560_v19, %v560_v19  ;;  %v2615_v18 = vld [vmem:[#allocation7 + $0x178] sm:$0xff]   ;;  %v887_v19 = vsub.s32 4, %v2988_v45 }
 0x30a   :  { %2245 = vmatmul.mubr.bf16.vlgmr.msra.gmra.mrb[12].mxu0 %v519_v23  ;;  %2265 = vmatmul.mubr.bf16.vlgmr.msra.gmra.mrb[12].mxu1 %v561_v24  ;;  %v888_v20 = vrot.slane %v2991_v47, %v887_v19 }
 0x30b   :  { %2269 = vmatpush3.bf16.msra.mxu0 %v2592_v22  ;;  %2289 = vmatpush3.bf16.msra.mxu1 %v2592_v22 }
 0x30c   :  { %2270 = vmatprep.subr.bf16.mxu0 %v2805_v0  ;;  %2290 = vmatprep.subr.bf16.mxu1 %v2805_v0 }
 0x30d   :  { %2284 = vmatprep.mubr.msk.bf16.mxu0 %vm2806_vm0, %v2805_v0  ;;  %2304 = vmatprep.mubr.msk.bf16.mxu1 %vm2806_vm0, %v2805_v0 }
 0x30f   :  { %2271 = vmatpush3.bf16.msra.mxu0 %v2593_v25  ;;  %2291 = vmatpush3.bf16.msra.mxu1 %v2593_v25 }
 0x310   :  { %2272 = vmatprep.subr.bf16.mxu0 %v2805_v0  ;;  %2292 = vmatprep.subr.bf16.mxu1 %v2805_v0 }
 0x313   :  { %2273 = vmatpush3.bf16.msra.mxu0 %v2594_v26  ;;  %2293 = vmatpush3.bf16.msra.mxu1 %v2594_v26 }
 0x314   :  { %2274 = vmatprep.subr.bf16.mxu0 %v2805_v0  ;;  %2294 = vmatprep.subr.bf16.mxu1 %v2805_v0 }
 0x317   :  { %2275 = vmatpush3.bf16.msra.mxu0 %v2595_v27  ;;  %2295 = vmatpush3.bf16.msra.mxu1 %v2595_v27 }
 0x318   :  { %2276 = vmatprep.subr.bf16.mxu0 %v2805_v0  ;;  %2296 = vmatprep.subr.bf16.mxu1 %v2805_v0 }
 0x31b   :  { %2277 = vmatpush3.bf16.msra.mxu0 %v2596_v28  ;;  %2297 = vmatpush3.bf16.msra.mxu1 %v2596_v28 }
 0x31c   :  { %2278 = vmatprep.subr.bf16.mxu0 %v2805_v0  ;;  %2298 = vmatprep.subr.bf16.mxu1 %v2805_v0 }
 0x31f   :  { %2279 = vmatpush3.bf16.msra.mxu0 %v2597_v29  ;;  %2299 = vmatpush3.bf16.msra.mxu1 %v2597_v29 }
 0x320   :  { %2280 = vmatprep.subr.bf16.mxu0 %v2805_v0  ;;  %2300 = vmatprep.subr.bf16.mxu1 %v2805_v0 }
 0x323   :  { %2281 = vmatpush3.bf16.msra.mxu0 %v2598_v30  ;;  %2301 = vmatpush3.bf16.msra.mxu1 %v2598_v30 }
 0x324   :  { %2282 = vmatprep.subr.bf16.mxu0 %v2805_v0  ;;  %2302 = vmatprep.subr.bf16.mxu1 %v2805_v0 }
 0x327   :  { %2283 = vmatpush3.bf16.msra.mxu0 %v2599_v31  ;;  %2303 = vmatpush3.bf16.msra.mxu1 %v2599_v31 }
 0x328   :  { %2308 = vmatprep.subr.bf16.mxu0 %v2805_v0  ;;  %2328 = vmatprep.subr.bf16.mxu1 %v2805_v0 }
 0x3dd   :  { %v665_v34 = vpop.f32.mrb[12].mxu0  ;;  %v707_v35 = vpop.f32.mrb[12].mxu1 }
 0x3de   :  { %v666_v36 = vadd.f32 %v665_v34, %v582_v33  ;;  %v708_v37 = vadd.f32 %v707_v35, %v582_v33  ;;  %v2246_v38 = vpop.f32.mrb[13].mxu0  ;;  %v2266_v39 = vpop.f32.mrb[13].mxu1  ;;  %v2616_v33 = vld [vmem:[#allocation7 + $0x180] sm:$0xff]  }
 0x3df   :  { %v668_v40 = vpop.f32.mrb[14].mxu0  ;;  %v710_v41 = vpop.f32.mrb[14].mxu1  ;;  %v2619_v38 = vld [vmem:[#allocation7 + $0x198] sm:$0xff]   ;;  %v2620_v39 = vld [vmem:[#allocation7 + $0x1a0] sm:$0xff]  }
 0x3e0   :  { %v671_v42 = vmax.f32 %v666_v36, 0.0  ;;  %v713_v43 = vmax.f32 %v708_v37, 0.0  ;;  %v2247_v44 = vpop.f32.mrb[15].mxu0  ;;  %v2267_v46 = vpop.f32.mrb[15].mxu1  ;;  %v2617_v36 = vld [vmem:[#allocation7 + $0x188] sm:$0xff]   ;;  %v2618_v37 = vld [vmem:[#allocation7 + $0x190] sm:$0xff]  }
 0x3e1   :  { %v2621_v40 = vld [vmem:[#allocation7 + $0x1a8] sm:$0xff]   ;;  %v2622_v41 = vld [vmem:[#allocation7 + $0x1b0] sm:$0xff]  }
 0x3e2   :  { %v672_v49 = vpack.c.bf16 %v671_v42, %v671_v42  ;;  %v714_v50 = vpack.c.bf16 %v713_v43, %v713_v43  ;;  %v2623_v42 = vld [vmem:[#allocation7 + $0x1b8] sm:$0xff]   ;;  %v1040_v43 = vsub.s32 5, %v2988_v45 }
 0x3e4   :  { %2285 = vmatmul.mubr.bf16.vlgmr.msra.gmra.mrb[16].mxu0 %v672_v49  ;;  %2305 = vmatmul.mubr.bf16.vlgmr.msra.gmra.mrb[16].mxu1 %v714_v50  ;;  %v1041_v44 = vrot.slane %v2991_v47, %v1040_v43 }
 0x3e5   :  { %2309 = vmatpush3.bf16.msra.mxu0 %v2600_v48  ;;  %2329 = vmatpush3.bf16.msra.mxu1 %v2600_v48 }
 0x3e6   :  { %2310 = vmatprep.subr.bf16.mxu0 %v2805_v0  ;;  %2330 = vmatprep.subr.bf16.mxu1 %v2805_v0 }
 0x3e7   :  { %2324 = vmatprep.mubr.msk.bf16.mxu0 %vm2806_vm0, %v2805_v0  ;;  %2344 = vmatprep.mubr.msk.bf16.mxu1 %vm2806_vm0, %v2805_v0 }
 0x3e9   :  { %2311 = vmatpush3.bf16.msra.mxu0 %v2601_v51  ;;  %2331 = vmatpush3.bf16.msra.mxu1 %v2601_v51 }
 0x3ea   :  { %2312 = vmatprep.subr.bf16.mxu0 %v2805_v0  ;;  %2332 = vmatprep.subr.bf16.mxu1 %v2805_v0 }
 0x3ed   :  { %2313 = vmatpush3.bf16.msra.mxu0 %v2602_v52  ;;  %2333 = vmatpush3.bf16.msra.mxu1 %v2602_v52 }
 0x3ee   :  { %2314 = vmatprep.subr.bf16.mxu0 %v2805_v0  ;;  %2334 = vmatprep.subr.bf16.mxu1 %v2805_v0 }
 0x3f1   :  { %2315 = vmatpush3.bf16.msra.mxu0 %v2603_v53  ;;  %2335 = vmatpush3.bf16.msra.mxu1 %v2603_v53 }
 0x3f2   :  { %2316 = vmatprep.subr.bf16.mxu0 %v2805_v0  ;;  %2336 = vmatprep.subr.bf16.mxu1 %v2805_v0 }
 0x3f5   :  { %2317 = vmatpush3.bf16.msra.mxu0 %v2604_v54  ;;  %2337 = vmatpush3.bf16.msra.mxu1 %v2604_v54 }
 0x3f6   :  { %2318 = vmatprep.subr.bf16.mxu0 %v2805_v0  ;;  %2338 = vmatprep.subr.bf16.mxu1 %v2805_v0 }
 0x3f9   :  { %2319 = vmatpush3.bf16.msra.mxu0 %v2605_v55  ;;  %2339 = vmatpush3.bf16.msra.mxu1 %v2605_v55 }
 0x3fa   :  { %2320 = vmatprep.subr.bf16.mxu0 %v2805_v0  ;;  %2340 = vmatprep.subr.bf16.mxu1 %v2805_v0 }
 0x3fd   :  { %2321 = vmatpush3.bf16.msra.mxu0 %v2606_v56  ;;  %2341 = vmatpush3.bf16.msra.mxu1 %v2606_v56 }
 0x3fe   :  { %2322 = vmatprep.subr.bf16.mxu0 %v2805_v0  ;;  %2342 = vmatprep.subr.bf16.mxu1 %v2805_v0 }
 0x401   :  { %2323 = vmatpush3.bf16.msra.mxu0 %v2607_v57  ;;  %2343 = vmatpush3.bf16.msra.mxu1 %v2607_v57 }
 0x402   :  { %2348 = vmatprep.subr.bf16.mxu0 %v2805_v0  ;;  %2368 = vmatprep.subr.bf16.mxu1 %v2805_v0 }
 0x4b7   :  { %v818_v60 = vpop.f32.mrb[16].mxu0  ;;  %v860_v61 = vpop.f32.mrb[16].mxu1 }
 0x4b8   :  { %v819_v62 = vadd.f32 %v818_v60, %v735_v59  ;;  %v861_v63 = vadd.f32 %v860_v61, %v735_v59  ;;  %v2286_v1 = vpop.f32.mrb[17].mxu0  ;;  %v2306_v2 = vpop.f32.mrb[17].mxu1  ;;  %v2624_v59 = vld [vmem:[#allocation7 + $0x1c0] sm:$0xff]  }
 0x4b9   :  { %v821_v3 = vpop.f32.mrb[18].mxu0  ;;  %v863_v4 = vpop.f32.mrb[18].mxu1  ;;  %v2627_v1 = vld [vmem:[#allocation7 + $0x1d8] sm:$0xff]   ;;  %v2628_v2 = vld [vmem:[#allocation7 + $0x1e0] sm:$0xff]  }
 0x4ba   :  { %v824_v5 = vmax.f32 %v819_v62, 0.0  ;;  %v866_v6 = vmax.f32 %v861_v63, 0.0  ;;  %v2287_v7 = vpop.f32.mrb[19].mxu0  ;;  %v2307_v8 = vpop.f32.mrb[19].mxu1  ;;  %v2625_v62 = vld [vmem:[#allocation7 + $0x1c8] sm:$0xff]   ;;  %v2626_v63 = vld [vmem:[#allocation7 + $0x1d0] sm:$0xff]  }
 0x4bb   :  { %v2629_v3 = vld [vmem:[#allocation7 + $0x1e8] sm:$0xff]   ;;  %v2630_v4 = vld [vmem:[#allocation7 + $0x1f0] sm:$0xff]  }
 0x4bc   :  { %v825_v10 = vpack.c.bf16 %v824_v5, %v824_v5  ;;  %v867_v11 = vpack.c.bf16 %v866_v6, %v866_v6  ;;  %v2631_v5 = vld [vmem:[#allocation7 + $0x1f8] sm:$0xff]   ;;  %v1193_v6 = vsub.s32 6, %v2988_v45 }
 0x4be   :  { %2325 = vmatmul.mubr.bf16.vlgmr.msra.gmra.mrb[20].mxu0 %v825_v10  ;;  %2345 = vmatmul.mubr.bf16.vlgmr.msra.gmra.mrb[20].mxu1 %v867_v11  ;;  %v1194_v7 = vrot.slane %v2991_v47, %v1193_v6 }
 0x4bf   :  { %2349 = vmatpush3.bf16.msra.mxu0 %v2608_v9  ;;  %2369 = vmatpush3.bf16.msra.mxu1 %v2608_v9 }
 0x4c0   :  { %2350 = vmatprep.subr.bf16.mxu0 %v2805_v0  ;;  %2370 = vmatprep.subr.bf16.mxu1 %v2805_v0 }
 0x4c1   :  { %2364 = vmatprep.mubr.msk.bf16.mxu0 %vm2806_vm0, %v2805_v0  ;;  %2384 = vmatprep.mubr.msk.bf16.mxu1 %vm2806_vm0, %v2805_v0 }
 0x4c3   :  { %2351 = vmatpush3.bf16.msra.mxu0 %v2609_v12  ;;  %2371 = vmatpush3.bf16.msra.mxu1 %v2609_v12 }
 0x4c4   :  { %2352 = vmatprep.subr.bf16.mxu0 %v2805_v0  ;;  %2372 = vmatprep.subr.bf16.mxu1 %v2805_v0 }
 0x4c7   :  { %2353 = vmatpush3.bf16.msra.mxu0 %v2610_v13  ;;  %2373 = vmatpush3.bf16.msra.mxu1 %v2610_v13 }
 0x4c8   :  { %2354 = vmatprep.subr.bf16.mxu0 %v2805_v0  ;;  %2374 = vmatprep.subr.bf16.mxu1 %v2805_v0 }
 0x4cb   :  { %2355 = vmatpush3.bf16.msra.mxu0 %v2611_v14  ;;  %2375 = vmatpush3.bf16.msra.mxu1 %v2611_v14 }
 0x4cc   :  { %2356 = vmatprep.subr.bf16.mxu0 %v2805_v0  ;;  %2376 = vmatprep.subr.bf16.mxu1 %v2805_v0 }
 0x4cf   :  { %2357 = vmatpush3.bf16.msra.mxu0 %v2612_v15  ;;  %2377 = vmatpush3.bf16.msra.mxu1 %v2612_v15 }
 0x4d0   :  { %2358 = vmatprep.subr.bf16.mxu0 %v2805_v0  ;;  %2378 = vmatprep.subr.bf16.mxu1 %v2805_v0 }
 0x4d3   :  { %2359 = vmatpush3.bf16.msra.mxu0 %v2613_v16  ;;  %2379 = vmatpush3.bf16.msra.mxu1 %v2613_v16 }
 0x4d4   :  { %2360 = vmatprep.subr.bf16.mxu0 %v2805_v0  ;;  %2380 = vmatprep.subr.bf16.mxu1 %v2805_v0 }
 0x4d7   :  { %2361 = vmatpush3.bf16.msra.mxu0 %v2614_v17  ;;  %2381 = vmatpush3.bf16.msra.mxu1 %v2614_v17 }
 0x4d8   :  { %2362 = vmatprep.subr.bf16.mxu0 %v2805_v0  ;;  %2382 = vmatprep.subr.bf16.mxu1 %v2805_v0 }
 0x4db   :  { %2363 = vmatpush3.bf16.msra.mxu0 %v2615_v18  ;;  %2383 = vmatpush3.bf16.msra.mxu1 %v2615_v18 }
 0x4dc   :  { %2388 = vmatprep.subr.bf16.mxu0 %v2805_v0  ;;  %2408 = vmatprep.subr.bf16.mxu1 %v2805_v0 }
 0x591   :  { %v971_v21 = vpop.f32.mrb[20].mxu0  ;;  %v1013_v22 = vpop.f32.mrb[20].mxu1 }
 0x592   :  { %v972_v23 = vadd.f32 %v971_v21, %v888_v20  ;;  %v1014_v24 = vadd.f32 %v1013_v22, %v888_v20  ;;  %v2326_v25 = vpop.f32.mrb[21].mxu0  ;;  %v2346_v26 = vpop.f32.mrb[21].mxu1  ;;  %v2632_v20 = vld [vmem:[#allocation7 + $0x200] sm:$0xff]  }
 0x593   :  { %v974_v27 = vpop.f32.mrb[22].mxu0  ;;  %v1016_v28 = vpop.f32.mrb[22].mxu1  ;;  %v2635_v25 = vld [vmem:[#allocation7 + $0x218] sm:$0xff]   ;;  %v2636_v26 = vld [vmem:[#allocation7 + $0x220] sm:$0xff]  }
 0x594   :  { %v977_v29 = vmax.f32 %v972_v23, 0.0  ;;  %v1019_v30 = vmax.f32 %v1014_v24, 0.0  ;;  %v2327_v31 = vpop.f32.mrb[23].mxu0  ;;  %v2347_v32 = vpop.f32.mrb[23].mxu1  ;;  %v2633_v23 = vld [vmem:[#allocation7 + $0x208] sm:$0xff]   ;;  %v2634_v24 = vld [vmem:[#allocation7 + $0x210] sm:$0xff]  }
 0x595   :  { %v2637_v27 = vld [vmem:[#allocation7 + $0x228] sm:$0xff]   ;;  %v2638_v28 = vld [vmem:[#allocation7 + $0x230] sm:$0xff]  }
 0x596   :  { %v978_v34 = vpack.c.bf16 %v977_v29, %v977_v29  ;;  %v1020_v35 = vpack.c.bf16 %v1019_v30, %v1019_v30  ;;  %v2639_v29 = vld [vmem:[#allocation7 + $0x238] sm:$0xff]   ;;  %v1346_v30 = vsub.s32 7, %v2988_v45 }
 0x597   :  { %v2641_v45 = vld [vmem:[#allocation10 + $0x8] sm:$0xff]  }
 0x598   :  { %2365 = vmatmul.mubr.bf16.vlgmr.msra.gmra.mrb[24].mxu0 %v978_v34  ;;  %2385 = vmatmul.mubr.bf16.vlgmr.msra.gmra.mrb[24].mxu1 %v1020_v35  ;;  %v1347_v31 = vrot.slane %v2991_v47, %v1346_v30  ;;  %v2642_v47 = vld [vmem:[#allocation10 + $0x10] sm:$0xff]  }
 0x599   :  { %2389 = vmatpush3.bf16.msra.mxu0 %v2616_v33  ;;  %2409 = vmatpush3.bf16.msra.mxu1 %v2616_v33 }
 0x59a   :  { %2390 = vmatprep.subr.bf16.mxu0 %v2805_v0  ;;  %2410 = vmatprep.subr.bf16.mxu1 %v2805_v0 }
 0x59b   :  { %2404 = vmatprep.mubr.msk.bf16.mxu0 %vm2806_vm0, %v2805_v0  ;;  %2424 = vmatprep.mubr.msk.bf16.mxu1 %vm2806_vm0, %v2805_v0 }
 0x59d   :  { %2391 = vmatpush3.bf16.msra.mxu0 %v2617_v36  ;;  %2411 = vmatpush3.bf16.msra.mxu1 %v2617_v36 }
 0x59e   :  { %2392 = vmatprep.subr.bf16.mxu0 %v2805_v0  ;;  %2412 = vmatprep.subr.bf16.mxu1 %v2805_v0 }
 0x5a1   :  { %2393 = vmatpush3.bf16.msra.mxu0 %v2618_v37  ;;  %2413 = vmatpush3.bf16.msra.mxu1 %v2618_v37 }
 0x5a2   :  { %2394 = vmatprep.subr.bf16.mxu0 %v2805_v0  ;;  %2414 = vmatprep.subr.bf16.mxu1 %v2805_v0 }
 0x5a5   :  { %2395 = vmatpush3.bf16.msra.mxu0 %v2619_v38  ;;  %2415 = vmatpush3.bf16.msra.mxu1 %v2619_v38 }
 0x5a6   :  { %2396 = vmatprep.subr.bf16.mxu0 %v2805_v0  ;;  %2416 = vmatprep.subr.bf16.mxu1 %v2805_v0 }
 0x5a9   :  { %2397 = vmatpush3.bf16.msra.mxu0 %v2620_v39  ;;  %2417 = vmatpush3.bf16.msra.mxu1 %v2620_v39 }
 0x5aa   :  { %2398 = vmatprep.subr.bf16.mxu0 %v2805_v0  ;;  %2418 = vmatprep.subr.bf16.mxu1 %v2805_v0 }
 0x5ad   :  { %2399 = vmatpush3.bf16.msra.mxu0 %v2621_v40  ;;  %2419 = vmatpush3.bf16.msra.mxu1 %v2621_v40 }
 0x5ae   :  { %2400 = vmatprep.subr.bf16.mxu0 %v2805_v0  ;;  %2420 = vmatprep.subr.bf16.mxu1 %v2805_v0 }
 0x5b1   :  { %2401 = vmatpush3.bf16.msra.mxu0 %v2622_v41  ;;  %2421 = vmatpush3.bf16.msra.mxu1 %v2622_v41 }
 0x5b2   :  { %2402 = vmatprep.subr.bf16.mxu0 %v2805_v0  ;;  %2422 = vmatprep.subr.bf16.mxu1 %v2805_v0 }
 0x5b5   :  { %2403 = vmatpush3.bf16.msra.mxu0 %v2623_v42  ;;  %2423 = vmatpush3.bf16.msra.mxu1 %v2623_v42 }
 0x5b6   :  { %2428 = vmatprep.subr.bf16.mxu0 %v2805_v0  ;;  %2448 = vmatprep.subr.bf16.mxu1 %v2805_v0 }
 0x66b   :  { %v1124_v46 = vpop.f32.mrb[24].mxu0  ;;  %v1166_v48 = vpop.f32.mrb[24].mxu1 }
 0x66c   :  { %v1125_v49 = vadd.f32 %v1124_v46, %v1041_v44  ;;  %v1167_v50 = vadd.f32 %v1166_v48, %v1041_v44  ;;  %v2366_v51 = vpop.f32.mrb[25].mxu0  ;;  %v2386_v52 = vpop.f32.mrb[25].mxu1  ;;  %v2640_v44 = vld [vmem:[#allocation10] sm:$0xff]  }
 0x66d   :  { %v1127_v53 = vpop.f32.mrb[26].mxu0  ;;  %v1169_v54 = vpop.f32.mrb[26].mxu1  ;;  %v2645_v51 = vld [vmem:[#allocation10 + $0x28] sm:$0xff]   ;;  %v2646_v52 = vld [vmem:[#allocation10 + $0x30] sm:$0xff]  }
 0x66e   :  { %v1130_v55 = vmax.f32 %v1125_v49, 0.0  ;;  %v1172_v56 = vmax.f32 %v1167_v50, 0.0  ;;  %v2367_v57 = vpop.f32.mrb[27].mxu0  ;;  %v2387_v58 = vpop.f32.mrb[27].mxu1  ;;  %v2643_v49 = vld [vmem:[#allocation10 + $0x18] sm:$0xff]   ;;  %v2644_v50 = vld [vmem:[#allocation10 + $0x20] sm:$0xff]  }
 0x66f   :  { %v2647_v53 = vld [vmem:[#allocation10 + $0x38] sm:$0xff]  }
 0x670   :  { %v1131_v60 = vpack.c.bf16 %v1130_v55, %v1130_v55  ;;  %v1173_v61 = vpack.c.bf16 %v1172_v56, %v1172_v56  ;;  %v1890_v54 = vld [vmem:[#allocation8 + $0x8] ss:$0 sm:$0xff] }
 0x672   :  { %2405 = vmatmul.mubr.bf16.vlgmr.msra.gmra.mrb[28].mxu0 %v1131_v60  ;;  %2425 = vmatmul.mubr.bf16.vlgmr.msra.gmra.mrb[28].mxu1 %v1173_v61 }
 0x673   :  { %2429 = vmatpush3.bf16.msra.mxu0 %v2624_v59  ;;  %2449 = vmatpush3.bf16.msra.mxu1 %v2624_v59 }
 0x674   :  { %2430 = vmatprep.subr.bf16.mxu0 %v2805_v0  ;;  %2450 = vmatprep.subr.bf16.mxu1 %v2805_v0 }
 0x675   :  { %2444 = vmatprep.mubr.msk.bf16.mxu0 %vm2806_vm0, %v2805_v0  ;;  %2464 = vmatprep.mubr.msk.bf16.mxu1 %vm2806_vm0, %v2805_v0 }
 0x677   :  { %2431 = vmatpush3.bf16.msra.mxu0 %v2625_v62  ;;  %2451 = vmatpush3.bf16.msra.mxu1 %v2625_v62 }
 0x678   :  { %2432 = vmatprep.subr.bf16.mxu0 %v2805_v0  ;;  %2452 = vmatprep.subr.bf16.mxu1 %v2805_v0 }
 0x67b   :  { %2433 = vmatpush3.bf16.msra.mxu0 %v2626_v63  ;;  %2453 = vmatpush3.bf16.msra.mxu1 %v2626_v63 }
 0x67c   :  { %2434 = vmatprep.subr.bf16.mxu0 %v2805_v0  ;;  %2454 = vmatprep.subr.bf16.mxu1 %v2805_v0 }
 0x67f   :  { %2435 = vmatpush3.bf16.msra.mxu0 %v2627_v1  ;;  %2455 = vmatpush3.bf16.msra.mxu1 %v2627_v1 }
 0x680   :  { %2436 = vmatprep.subr.bf16.mxu0 %v2805_v0  ;;  %2456 = vmatprep.subr.bf16.mxu1 %v2805_v0 }
 0x683   :  { %2437 = vmatpush3.bf16.msra.mxu0 %v2628_v2  ;;  %2457 = vmatpush3.bf16.msra.mxu1 %v2628_v2 }
 0x684   :  { %2438 = vmatprep.subr.bf16.mxu0 %v2805_v0  ;;  %2458 = vmatprep.subr.bf16.mxu1 %v2805_v0 }
 0x687   :  { %2439 = vmatpush3.bf16.msra.mxu0 %v2629_v3  ;;  %2459 = vmatpush3.bf16.msra.mxu1 %v2629_v3 }
 0x688   :  { %2440 = vmatprep.subr.bf16.mxu0 %v2805_v0  ;;  %2460 = vmatprep.subr.bf16.mxu1 %v2805_v0 }
 0x68b   :  { %2441 = vmatpush3.bf16.msra.mxu0 %v2630_v4  ;;  %2461 = vmatpush3.bf16.msra.mxu1 %v2630_v4 }
 0x68c   :  { %2442 = vmatprep.subr.bf16.mxu0 %v2805_v0  ;;  %2462 = vmatprep.subr.bf16.mxu1 %v2805_v0 }
 0x68f   :  { %2443 = vmatpush3.bf16.msra.mxu0 %v2631_v5  ;;  %2463 = vmatpush3.bf16.msra.mxu1 %v2631_v5 }
 0x690   :  { %2468 = vmatprep.subr.bf16.mxu0 %v2805_v0  ;;  %2488 = vmatprep.subr.bf16.mxu1 %v2805_v0 }
 0x745   :  { %v1277_v8 = vpop.f32.mrb[28].mxu0  ;;  %v1319_v9 = vpop.f32.mrb[28].mxu1 }
 0x746   :  { %v1278_v10 = vadd.f32 %v1277_v8, %v1194_v7  ;;  %v1320_v11 = vadd.f32 %v1319_v9, %v1194_v7  ;;  %v2406_v12 = vpop.f32.mrb[29].mxu0  ;;  %v2426_v13 = vpop.f32.mrb[29].mxu1 }
 0x747   :  { %v1280_v14 = vpop.f32.mrb[30].mxu0  ;;  %v1322_v15 = vpop.f32.mrb[30].mxu1 }
 0x748   :  { %v1283_v16 = vmax.f32 %v1278_v10, 0.0  ;;  %v1325_v17 = vmax.f32 %v1320_v11, 0.0  ;;  %v2407_v18 = vpop.f32.mrb[31].mxu0  ;;  %v2427_v19 = vpop.f32.mrb[31].mxu1 }
 0x74a   :  { %v1284_v21 = vpack.c.bf16 %v1283_v16, %v1283_v16  ;;  %v1326_v22 = vpack.c.bf16 %v1325_v17, %v1325_v17 }
 0x74c   :  { %2445 = vmatmul.mubr.bf16.vlgmr.msra.gmra.mrb[32].mxu0 %v1284_v21  ;;  %2465 = vmatmul.mubr.bf16.vlgmr.msra.gmra.mrb[32].mxu1 %v1326_v22 }
 0x74d   :  { %2469 = vmatpush3.bf16.msra.mxu0 %v2632_v20  ;;  %2489 = vmatpush3.bf16.msra.mxu1 %v2632_v20 }
 0x74e   :  { %2470 = vmatprep.subr.bf16.mxu0 %v2805_v0  ;;  %2490 = vmatprep.subr.bf16.mxu1 %v2805_v0 }
 0x74f   :  { %2484 = vmatprep.mubr.msk.bf16.mxu0 %vm2806_vm0, %v2805_v0  ;;  %2504 = vmatprep.mubr.msk.bf16.mxu1 %vm2806_vm0, %v2805_v0 }
 0x751   :  { %2471 = vmatpush3.bf16.msra.mxu0 %v2633_v23  ;;  %2491 = vmatpush3.bf16.msra.mxu1 %v2633_v23 }
 0x752   :  { %2472 = vmatprep.subr.bf16.mxu0 %v2805_v0  ;;  %2492 = vmatprep.subr.bf16.mxu1 %v2805_v0 }
 0x755   :  { %2473 = vmatpush3.bf16.msra.mxu0 %v2634_v24  ;;  %2493 = vmatpush3.bf16.msra.mxu1 %v2634_v24 }
 0x756   :  { %2474 = vmatprep.subr.bf16.mxu0 %v2805_v0  ;;  %2494 = vmatprep.subr.bf16.mxu1 %v2805_v0 }
 0x759   :  { %2475 = vmatpush3.bf16.msra.mxu0 %v2635_v25  ;;  %2495 = vmatpush3.bf16.msra.mxu1 %v2635_v25 }
 0x75a   :  { %2476 = vmatprep.subr.bf16.mxu0 %v2805_v0  ;;  %2496 = vmatprep.subr.bf16.mxu1 %v2805_v0 }
 0x75d   :  { %2477 = vmatpush3.bf16.msra.mxu0 %v2636_v26  ;;  %2497 = vmatpush3.bf16.msra.mxu1 %v2636_v26 }
 0x75e   :  { %2478 = vmatprep.subr.bf16.mxu0 %v2805_v0  ;;  %2498 = vmatprep.subr.bf16.mxu1 %v2805_v0 }
 0x761   :  { %2479 = vmatpush3.bf16.msra.mxu0 %v2637_v27  ;;  %2499 = vmatpush3.bf16.msra.mxu1 %v2637_v27 }
 0x762   :  { %2480 = vmatprep.subr.bf16.mxu0 %v2805_v0  ;;  %2500 = vmatprep.subr.bf16.mxu1 %v2805_v0 }
 0x765   :  { %2481 = vmatpush3.bf16.msra.mxu0 %v2638_v28  ;;  %2501 = vmatpush3.bf16.msra.mxu1 %v2638_v28 }
 0x766   :  { %2482 = vmatprep.subr.bf16.mxu0 %v2805_v0  ;;  %2502 = vmatprep.subr.bf16.mxu1 %v2805_v0 }
 0x769   :  { %2483 = vmatpush3.bf16.msra.mxu0 %v2639_v29  ;;  %2503 = vmatpush3.bf16.msra.mxu1 %v2639_v29 }
 0x76a   :  { %2508 = vmatprep.subr.bf16.mxu0 %v2805_v0  ;;  %2528 = vmatprep.subr.bf16.mxu1 %v2805_v0 }
 0x81f   :  { %v1430_v32 = vpop.f32.mrb[32].mxu0  ;;  %v1472_v33 = vpop.f32.mrb[32].mxu1 }
 0x820   :  { %v1431_v34 = vadd.f32 %v1430_v32, %v1347_v31  ;;  %v1473_v35 = vadd.f32 %v1472_v33, %v1347_v31  ;;  %v2446_v36 = vpop.f32.mrb[33].mxu0  ;;  %v2466_v37 = vpop.f32.mrb[33].mxu1 }
 0x821   :  { %v1433_v38 = vpop.f32.mrb[34].mxu0  ;;  %v1475_v39 = vpop.f32.mrb[34].mxu1 }
 0x822   :  { %v1436_v40 = vmax.f32 %v1431_v34, 0.0  ;;  %v1478_v41 = vmax.f32 %v1473_v35, 0.0  ;;  %v2447_v42 = vpop.f32.mrb[35].mxu0  ;;  %v2467_v43 = vpop.f32.mrb[35].mxu1 }
 0x824   :  { %v1437_v46 = vpack.c.bf16 %v1436_v40, %v1436_v40  ;;  %v1479_v48 = vpack.c.bf16 %v1478_v41, %v1478_v41 }
 0x826   :  { %2485 = vmatmul.mubr.bf16.vlgmr.msra.gmra.mrb[36].mxu0 %v1437_v46  ;;  %2505 = vmatmul.mubr.bf16.vlgmr.msra.gmra.mrb[36].mxu1 %v1479_v48 }
 0x827   :  { %2509 = vmatpush3.bf16.msra.mxu0 %v2640_v44  ;;  %2529 = vmatpush3.bf16.msra.mxu1 %v2640_v44 }
 0x828   :  { %2510 = vmatprep.subr.bf16.mxu0 %v2805_v0  ;;  %2530 = vmatprep.subr.bf16.mxu1 %v2805_v0 }
 0x829   :  { %2524 = vmatprep.mubr.msk.bf16.mxu0 %vm2806_vm0, %v2805_v0  ;;  %2544 = vmatprep.mubr.msk.bf16.mxu1 %vm2806_vm0, %v2805_v0 }
 0x82b   :  { %2511 = vmatpush3.bf16.msra.mxu0 %v2641_v45  ;;  %2531 = vmatpush3.bf16.msra.mxu1 %v2641_v45 }
 0x82c   :  { %2512 = vmatprep.subr.bf16.mxu0 %v2805_v0  ;;  %2532 = vmatprep.subr.bf16.mxu1 %v2805_v0 }
 0x82f   :  { %2513 = vmatpush3.bf16.msra.mxu0 %v2642_v47  ;;  %2533 = vmatpush3.bf16.msra.mxu1 %v2642_v47 }
 0x830   :  { %2514 = vmatprep.subr.bf16.mxu0 %v2805_v0  ;;  %2534 = vmatprep.subr.bf16.mxu1 %v2805_v0 }
 0x833   :  { %2515 = vmatpush3.bf16.msra.mxu0 %v2643_v49  ;;  %2535 = vmatpush3.bf16.msra.mxu1 %v2643_v49 }
 0x834   :  { %2516 = vmatprep.subr.bf16.mxu0 %v2805_v0  ;;  %2536 = vmatprep.subr.bf16.mxu1 %v2805_v0 }
 0x837   :  { %2517 = vmatpush3.bf16.msra.mxu0 %v2644_v50  ;;  %2537 = vmatpush3.bf16.msra.mxu1 %v2644_v50 }
 0x838   :  { %2518 = vmatprep.subr.bf16.mxu0 %v2805_v0  ;;  %2538 = vmatprep.subr.bf16.mxu1 %v2805_v0 }
 0x83b   :  { %2519 = vmatpush3.bf16.msra.mxu0 %v2645_v51  ;;  %2539 = vmatpush3.bf16.msra.mxu1 %v2645_v51 }
 0x83c   :  { %2520 = vmatprep.subr.bf16.mxu0 %v2805_v0  ;;  %2540 = vmatprep.subr.bf16.mxu1 %v2805_v0 }
 0x83f   :  { %2521 = vmatpush3.bf16.msra.mxu0 %v2646_v52  ;;  %2541 = vmatpush3.bf16.msra.mxu1 %v2646_v52 }
 0x840   :  { %2522 = vmatprep.subr.bf16.mxu0 %v2805_v0  ;;  %2542 = vmatprep.subr.bf16.mxu1 %v2805_v0  ;;  %v1899_v0 = vld [vmem:[%s3190_s6] ss:$0 sm:$0xff]  ;;  %s2807_s6 = smov [#allocation11]  }
 0x841   :  { %s1803_s20 = sshll.u32 %s2807_s6, 4  ;;  %s1804_s20 = int_to_ptr.vmem [resolvable:$true] %s1803_s20 }
 0x842   :  { %s2766_s21 = scalar_lea.vmem %s1804_s20, 256  ;;  %p2771_p13 = scmp.lt.s32.totalorder %s1804_s20, %s1804_s20 }
 0x843   :  { %2523 = vmatpush3.bf16.msra.mxu0 %v2647_v53  ;;  %2543 = vmatpush3.bf16.msra.mxu1 %v2647_v53  ;;  %p2767_p12 = scmp.ne.s32.totalorder %s1804_s20, %s2766_s21  ;;  %p2772_p0 = scmp.lt.s32.totalorder %s2766_s21, %s2766_s21 }
 0x845   :  { %p2773_p1 = por %p2772_p0, %p2771_p13 }
 0x847   :  { %p2774_p2 = pnand %p2773_p1, %p2767_p12 }
 0x8f9   :  { %v1583_v55 = vpop.f32.mrb[36].mxu0  ;;  %v1625_v56 = vpop.f32.mrb[36].mxu1 }
 0x8fa   :  { %v1584_v57 = vadd.f32 %v1890_v54, %v1583_v55  ;;  %v1626_v58 = vadd.f32 %v1890_v54, %v1625_v56  ;;  %v2486_v59 = vpop.f32.mrb[37].mxu0  ;;  %v2506_v60 = vpop.f32.mrb[37].mxu1 }
 0x8fb   :  { %v1586_v61 = vpop.f32.mrb[38].mxu0  ;;  %v1628_v62 = vpop.f32.mrb[38].mxu1 }
 0x8fc   :  { %v1589_v63 = vmax.f32 %v1584_v57, 0.0  ;;  %v1631_v1 = vmax.f32 %v1626_v58, 0.0  ;;  %v2487_v2 = vpop.f32.mrb[39].mxu0  ;;  %v2507_v3 = vpop.f32.mrb[39].mxu1 }
 0x8fe   :  { %v1590_v4 = vpack.c.bf16 %v1589_v63, %v1589_v63  ;;  %v1632_v5 = vpack.c.bf16 %v1631_v1, %v1631_v1 }
 0x900   :  { %2525 = vmatmul.mubr.bf16.vlgmr.msra.gmra.mrb[40].mxu0 %v1590_v4  ;;  %2545 = vmatmul.mubr.bf16.vlgmr.msra.gmra.mrb[40].mxu1 %v1632_v5 }
 0x9d3   :  { %v1738_v6 = vpop.f32.mrb[40].mxu0  ;;  %v1778_v7 = vpop.f32.mrb[40].mxu1 }
 0x9d4   :  { %v1739_v8 = vadd.f32 %v1899_v0, %v1738_v6  ;;  %v1779_v9 = vadd.f32 %v1899_v0, %v1778_v7  ;;  %v2526_v10 = vpop.f32.mrb[41].mxu0  ;;  %v2546_v11 = vpop.f32.mrb[41].mxu1 }
 0x9d5   :  { %v1741_v12 = vpop.f32.mrb[42].mxu0  ;;  %v1781_v13 = vpop.f32.mrb[42].mxu1 }
 0x9d6   :  { %v1908_v14 = vmul.f32 -1.442695, %v1739_v8  ;;  %v1909_v15 = vmul.f32 -1.442695, %v1779_v9  ;;  %v2527_v16 = vpop.f32.mrb[43].mxu0  ;;  %v2547_v17 = vpop.f32.mrb[43].mxu1 }
 0x9d8   :  { %2648 = vpow2.f32 %v1908_v14 }
 0x9d9   :  { %2650 = vpow2.f32 %v1909_v15 }
 0x9e2   :  { %v2649_v18 = vpop.eup %2648 }
 0x9e3   :  { %v2651_v19 = vpop.eup %2650  ;;  %v1787_v20 = vadd.f32 1.0, %v2649_v18 }
 0x9e4   :  { %v1794_v21 = vadd.f32 1.0, %v2651_v19 }
 0x9e5   :  { %2652 = vrcp.f32 %v1787_v20 }
 0x9e6   :  { %2654 = vrcp.f32 %v1794_v21 }
 0x9ef   :  { %v2653_v22 = vpop.eup %2652 }
 0x9f0   :  { %v2655_v23 = vpop.eup %2654  ;;  %1790 = vst [vmem:[#allocation11] sm:$0xff] %v2653_v22 }
 0x9f1   :  { %1797 = vst [vmem:[#allocation11 + $0x8] sm:$0xff] %v2655_v23 }
 0x9f2   :  { %2777 = shalt.err (!%p2774_p2)
}
 0x9f3   :  { %s2778_s24 = scalar_lea.hbm %s3191_s7, 256 }
 0x9f4   :  { %p2779_p3 = scmp.ne.s32.totalorder %s3191_s7, %s2778_s24  ;;  %p2782_p4 = scmp.lt.u32.totalorder %s2778_s24, %s3191_s7 }
 0x9f6   :  { %p2784_p5 = pnand %p2782_p4, %p2779_p3 }
 0x9f8   :  { %2787 = shalt.err (!%p2784_p5)
}
 0x9f9   :  { %1809 = dma.vmem_to_hbm [thread:$0]  %s1804_s20, 256, %s3191_s7, [#allocation4], %s2801_s25, %s2801_s25, %s2802_s27  }
 0x9fa   :  { %2794 = dma.done.wait [#allocation4], 256  }
 0x9fb   :  { %2795 = vsyncadd [#allocation4], 4294967040 }
 0x9fc   :  { %1813 = vsyncpa [#allocation3], 1 }
 0x9fd   :  { %1814 = vsyncpa [#allocation6], 1 }
 0x9fe   :  { %1815 = vsyncpa [#allocation9], 1 }
 0x9ff   :  { %1816 = vsyncpa [#allocation4], 1 }

</bundles_post_ra>
